<compile_context>
chip_gen: v6e
topology: v6e:2x2x1
jax: 0.10.0
libtpu: 0.0.40
codegen_flags: <defaults>
</compile_context>

<pallas_src>
import jax
import jax.numpy as jnp
from jax import lax
from jax.experimental import pallas as pl
from jax.experimental.pallas import tpu as pltpu


def _fold_parity_weights(w_oihw):
    """Fold conv3x3-on-nearest-x2-upsample into four 2x2 parity convs.

    Returns wf of shape (4, C2, 4*Cin); parity p = 2*r + s (r = output row
    parity, s = output col parity); columns ordered [(dh, dw) major, ci minor].
    """

    def fold(w, axis, parity):
        w0 = lax.index_in_dim(w, 0, axis, keepdims=False)
        w1 = lax.index_in_dim(w, 1, axis, keepdims=False)
        w2 = lax.index_in_dim(w, 2, axis, keepdims=False)
        if parity == 0:
            return [w0, w1 + w2]      # taps hit original rows/cols (a-1, a)
        return [w0 + w1, w2]          # taps hit original rows/cols (a, a+1)

    parts = []
    for r in range(2):
        rows = fold(w_oihw, 2, r)                 # each (C2, Cin, 3)
        for s in range(2):
            taps = []
            for dh in range(2):
                cols = fold(rows[dh], 2, s)       # each (C2, Cin)
                for dw in range(2):
                    taps.append(cols[dw])
            parts.append(jnp.concatenate(taps, axis=1))     # (C2, 4*Cin)
    return jnp.stack(parts, axis=0).astype(jnp.float32)      # (4, C2, 4*Cin)


@jax.jit
def upblock_forward(x_nchw, w_oihw, gamma, beta):
    """x_nchw: (N, Cin, H0, W0); w_oihw: (2*Cout, Cin, 3, 3) -> (N, Cout, 2H0, 2W0)."""
    eps = 1e-5
    N, Cin, H0, W0 = x_nchw.shape
    C2 = w_oihw.shape[0]
    Cout = C2 // 2
    H, W = 2 * H0, 2 * W0
    L = H0 * W0
    Lp = L + 2 * (W0 + 1)

    # ---- cheap wrapper prep: NO upsample materialization, only a ~1.1x pad ----
    x_flat = x_nchw.reshape(N, Cin, L).astype(jnp.float32)
    x_padf = jnp.pad(x_flat, ((0, 0), (0, 0), (W0 + 1, W0 + 1)))   # (N, Cin, Lp)
    wf = _fold_parity_weights(w_oihw)                               # (4, C2, 4*Cin)

    def conv_parities(x_ref, wf_ref):
        # x_ref: (1, Cin, Lp) block for the current sample (flat, zero padded).
        b_idx = lax.broadcasted_iota(jnp.int32, (1, L), 1) % W0
        col_ok = {-1: b_idx >= 1, 0: None, 1: b_idx <= (W0 - 2)}
        # 9 distinct shifted patches, spatial flattened on the lane axis.
        patches = {}
        for oh in (-1, 0, 1):
            for ow in (-1, 0, 1):
                start = (oh + 1) * W0 + ow + 1
                p = x_ref[0, :, pl.ds(start, L)]                    # (Cin, L)
                m = col_ok[ow]
                if m is not None:
                    p = jnp.where(m, p, 0.0)
                patches[(oh, ow)] = p
        ys = []
        for r in range(2):
            for s in range(2):
                taps = [patches[(dh - 1 + r, dw - 1 + s)]
                        for dh in range(2) for dw in range(2)]
                pmat = jnp.concatenate(taps, axis=0)                # (4*Cin, L)
                ys.append(jnp.dot(wf_ref[2 * r + s], pmat,
                                  preferred_element_type=jnp.float32))
        return ys                                                   # 4 x (C2, L)

    conv_flops = 2 * N * 4 * C2 * (4 * Cin) * L
    in_bytes = x_padf.size * 4 + wf.size * 4

    # ------------- pass 1: per-sample per-channel sum / sum-of-squares -------------
    def stats_kernel(x_ref, wf_ref, st_ref):
        ys = conv_parities(x_ref, wf_ref)
        s1 = sum(jnp.sum(y, axis=1, keepdims=True) for y in ys)       # (C2, 1)
        s2 = sum(jnp.sum(y * y, axis=1, keepdims=True) for y in ys)   # (C2, 1)
        st_ref[0, :, :] = jnp.concatenate([s1, s2], axis=1)           # (C2, 2)

    stats = pl.pallas_call(
        stats_kernel,
        out_shape=jax.ShapeDtypeStruct((N, C2, 2), jnp.float32),
        grid=(N,),
        in_specs=[
            pl.BlockSpec((1, Cin, Lp), lambda n: (n, 0, 0)),
            pl.BlockSpec((4, C2, 4 * Cin), lambda n: (0, 0, 0)),
        ],
        out_specs=pl.BlockSpec((1, C2, 2), lambda n: (n, 0, 0)),
        compiler_params=pltpu.CompilerParams(
            dimension_semantics=("parallel",),
            vmem_limit_bytes=32 * 1024 * 1024),
        cost_estimate=pl.CostEstimate(
            flops=conv_flops, transcendentals=0,
            bytes_accessed=in_bytes + N * C2 * 2 * 4),
    )(x_padf, wf)

    # ---- fold BatchNorm (biased batch stats over N,H,W) into one per-channel FMA ----
    count = float(N * H * W)
    s1 = jnp.sum(stats[:, :, 0], axis=0)
    s2 = jnp.sum(stats[:, :, 1], axis=0)
    mean = s1 / count
    var = jnp.maximum(s2 / count - mean * mean, 0.0)
    scale = (gamma.astype(jnp.float32) * lax.rsqrt(var + eps)).reshape(C2, 1)
    shift = beta.astype(jnp.float32).reshape(C2, 1) - mean.reshape(C2, 1) * scale

    # ------------- pass 2: conv + BN FMA + GLU, parity-major lane-dense output -------------
    def apply_kernel(x_ref, wf_ref, sc_ref, sh_ref, o_ref):
        ys = conv_parities(x_ref, wf_ref)
        sc = sc_ref[...]
        sh = sh_ref[...]
        for p in range(4):
            y = ys[p] * sc + sh                     # (C2, L)
            a = y[:Cout, :]
            g = y[Cout:, :]
            o_ref[0, p, :, :] = (a * jax.nn.sigmoid(g)).astype(o_ref.dtype)

    out_p = pl.pallas_call(
        apply_kernel,
        out_shape=jax.ShapeDtypeStruct((N, 4, Cout, L), x_nchw.dtype),
        grid=(N,),
        in_specs=[
            pl.BlockSpec((1, Cin, Lp), lambda n: (n, 0, 0)),
            pl.BlockSpec((4, C2, 4 * Cin), lambda n: (0, 0, 0)),
            pl.BlockSpec((C2, 1), lambda n: (0, 0)),
            pl.BlockSpec((C2, 1), lambda n: (0, 0)),
        ],
        out_specs=pl.BlockSpec((1, 4, Cout, L), lambda n: (n, 0, 0, 0)),
        compiler_params=pltpu.CompilerParams(
            dimension_semantics=("parallel",),
            vmem_limit_bytes=32 * 1024 * 1024),
        cost_estimate=pl.CostEstimate(
            flops=conv_flops, transcendentals=N * 4 * Cout * L,
            bytes_accessed=in_bytes + 2 * C2 * 4 + N * 4 * Cout * L * 4),
    )(x_padf, wf, scale, shift)

    # parity-major (N, p=2r+s, Cout, H0*W0) -> NCHW (N, Cout, 2*H0, 2*W0)
    out = out_p.reshape(N, 2, 2, Cout, H0, W0)
    out = jnp.transpose(out, (0, 3, 4, 1, 5, 2)).reshape(N, Cout, H, W)
    return out


def upblock_reference(x_nchw, w_oihw, gamma, beta):
    """Pure-JAX reference of the PyTorch forward (for a sanity check)."""
    eps = 1e-5
    x = jnp.repeat(jnp.repeat(x_nchw, 2, axis=2), 2, axis=3)
    y = lax.conv_general_dilated(
        x, w_oihw, window_strides=(1, 1), padding=((1, 1), (1, 1)),
        dimension_numbers=("NCHW", "OIHW", "NCHW"),
        precision=lax.Precision.HIGHEST)
    mean = jnp.mean(y, axis=(0, 2, 3), keepdims=True)
    var = jnp.mean((y - mean) ** 2, axis=(0, 2, 3), keepdims=True)
    y = (y - mean) * lax.rsqrt(var + eps)
    y = y * gamma.reshape(1, -1, 1, 1) + beta.reshape(1, -1, 1, 1)
    c = y.shape[1] // 2
    return y[:, :c] * jax.nn.sigmoid(y[:, c:])


if __name__ == "__main__":
    key = jax.random.PRNGKey(0)
    k1, k2, k3, k4 = jax.random.split(key, 4)

    N, Cin, H0, W0 = 2, 4, 16, 16
    Cout = 4  # UpBlock(in_channels=4, out_channels=4) -> conv has 2*Cout=8 outputs

    x = jax.random.normal(k1, (N, Cin, H0, W0), jnp.float32)
    w = 0.1 * jax.random.normal(k2, (2 * Cout, Cin, 3, 3), jnp.float32)
    gamma = 1.0 + 0.1 * jax.random.normal(k3, (2 * Cout,), jnp.float32)
    beta = 0.1 * jax.random.normal(k4, (2 * Cout,), jnp.float32)

    out = jax.block_until_ready(upblock_forward(x, w, gamma, beta))
    assert out.shape == (N, Cout, 2 * H0, 2 * W0), out.shape

    ref = jax.block_until_ready(upblock_reference(x, w, gamma, beta))
    err = float(jnp.max(jnp.abs(out - ref)))
    assert jnp.allclose(out, ref, rtol=1e-2, atol=1e-2), err

    print("KERNEL_OK")
</pallas_src>

<mosaic_0001>
module attributes {stable_mosaic.version = 11 : i64} {
  func.func @stats_kernel(%arg0: i32, %arg1: memref<1x4x290xf32, #tpu.memory_space<vmem>>, %arg2: memref<4x8x16xf32, #tpu.memory_space<vmem>>, %arg3: memref<1x8x2xf32, #tpu.memory_space<vmem>>) attributes {dimension_semantics = [#tpu.dimension_semantics<parallel>], iteration_bounds = array<i64: 2>, scalar_prefetch = 0 : i64, scratch_operands = 0 : i64, tpu.core_type = #tpu.core_type<tc>, window_params = [{transform_indices = @transform_0, window_bounds = array<i64: 1, 4, 290>}, {pipeline_mode = #tpu.pipeline_mode<synchronous>, transform_indices = @transform_1, window_bounds = array<i64: 4, 8, 16>}, {transform_indices = @transform_2, window_bounds = array<i64: 1, 8, 2>}]} {
    %0 = tpu.iota {dimensions = array<i32: 1>} : vector<1x256xi32>
    %c16_i32 = arith.constant 16 : i32
    %c0_i32 = arith.constant 0 : i32
    %1 = arith.cmpi eq, %c16_i32, %c0_i32 : i32
    %c1_i32 = arith.constant 1 : i32
    %2 = arith.select %1, %c1_i32, %c16_i32 : i32
    %3 = vector.broadcast %2 : i32 to vector<1x256xi32>
    %4 = arith.remsi %0, %3 : vector<1x256xi32>
    %c0_i32_0 = arith.constant 0 : i32
    %5 = vector.broadcast %c0_i32_0 : i32 to vector<1x256xi32>
    %6 = arith.cmpi ne, %4, %5 : vector<1x256xi32>
    %c0_i32_1 = arith.constant 0 : i32
    %7 = vector.broadcast %c0_i32_1 : i32 to vector<1x256xi32>
    %8 = arith.cmpi slt, %4, %7 : vector<1x256xi32>
    %c0_i32_2 = arith.constant 0 : i32
    %9 = arith.cmpi slt, %2, %c0_i32_2 : i32
    %10 = vector.broadcast %9 : i1 to vector<1x256xi1>
    %11 = vector.broadcast %10 : vector<1x256xi1> to vector<1x256xi1>
    %12 = arith.xori %8, %11 : vector<1x256xi1>
    %13 = arith.andi %12, %6 : vector<1x256xi1>
    %14 = vector.broadcast %2 : i32 to vector<1x256xi32>
    %15 = arith.addi %4, %14 : vector<1x256xi32>
    %16 = arith.select %13, %15, %4 : vector<1x256xi1>, vector<1x256xi32>
    %c1_i32_3 = arith.constant 1 : i32
    %17 = vector.broadcast %c1_i32_3 : i32 to vector<1x256xi32>
    %18 = arith.cmpi sge, %16, %17 : vector<1x256xi32>
    %c14_i32 = arith.constant 14 : i32
    %19 = vector.broadcast %c14_i32 : i32 to vector<1x256xi32>
    %20 = arith.cmpi sle, %16, %19 : vector<1x256xi32>
    %c0 = arith.constant 0 : index
    %c0_4 = arith.constant 0 : index
    %c0_5 = arith.constant 0 : index
    %21 = vector.load %arg1[%c0, %c0_4, %c0_5] : memref<1x4x290xf32, #tpu.memory_space<vmem>>, vector<1x4x256xf32>
    %22 = vector.shape_cast %21 : vector<1x4x256xf32> to vector<4x256xf32>
    %cst = arith.constant 0.000000e+00 : f32
    %23 = vector.shape_cast %18 : vector<1x256xi1> to vector<1x256xi1>
    %24 = vector.broadcast %23 : vector<1x256xi1> to vector<4x256xi1>
    %25 = vector.broadcast %cst : f32 to vector<4x256xf32>
    %26 = arith.select %24, %22, %25 : vector<4x256xi1>, vector<4x256xf32>
    %c0_6 = arith.constant 0 : index
    %c0_7 = arith.constant 0 : index
    %c1 = arith.constant 1 : index
    %27 = vector.load %arg1[%c0_6, %c0_7, %c1] : memref<1x4x290xf32, #tpu.memory_space<vmem>>, vector<1x4x256xf32>
    %28 = vector.shape_cast %27 : vector<1x4x256xf32> to vector<4x256xf32>
    %c0_8 = arith.constant 0 : index
    %c0_9 = arith.constant 0 : index
    %c2 = arith.constant 2 : index
    %29 = vector.load %arg1[%c0_8, %c0_9, %c2] : memref<1x4x290xf32, #tpu.memory_space<vmem>>, vector<1x4x256xf32>
    %30 = vector.shape_cast %29 : vector<1x4x256xf32> to vector<4x256xf32>
    %cst_10 = arith.constant 0.000000e+00 : f32
    %31 = vector.shape_cast %20 : vector<1x256xi1> to vector<1x256xi1>
    %32 = vector.broadcast %31 : vector<1x256xi1> to vector<4x256xi1>
    %33 = vector.broadcast %cst_10 : f32 to vector<4x256xf32>
    %34 = arith.select %32, %30, %33 : vector<4x256xi1>, vector<4x256xf32>
    %c0_11 = arith.constant 0 : index
    %c0_12 = arith.constant 0 : index
    %c16 = arith.constant 16 : index
    %35 = vector.load %arg1[%c0_11, %c0_12, %c16] : memref<1x4x290xf32, #tpu.memory_space<vmem>>, vector<1x4x256xf32>
    %36 = vector.shape_cast %35 : vector<1x4x256xf32> to vector<4x256xf32>
    %cst_13 = arith.constant 0.000000e+00 : f32
    %37 = vector.shape_cast %18 : vector<1x256xi1> to vector<1x256xi1>
    %38 = vector.broadcast %37 : vector<1x256xi1> to vector<4x256xi1>
    %39 = vector.broadcast %cst_13 : f32 to vector<4x256xf32>
    %40 = arith.select %38, %36, %39 : vector<4x256xi1>, vector<4x256xf32>
    %c0_14 = arith.constant 0 : index
    %c0_15 = arith.constant 0 : index
    %c17 = arith.constant 17 : index
    %41 = vector.load %arg1[%c0_14, %c0_15, %c17] : memref<1x4x290xf32, #tpu.memory_space<vmem>>, vector<1x4x256xf32>
    %42 = vector.shape_cast %41 : vector<1x4x256xf32> to vector<4x256xf32>
    %c0_16 = arith.constant 0 : index
    %c0_17 = arith.constant 0 : index
    %c18 = arith.constant 18 : index
    %43 = vector.load %arg1[%c0_16, %c0_17, %c18] : memref<1x4x290xf32, #tpu.memory_space<vmem>>, vector<1x4x256xf32>
    %44 = vector.shape_cast %43 : vector<1x4x256xf32> to vector<4x256xf32>
    %cst_18 = arith.constant 0.000000e+00 : f32
    %45 = vector.shape_cast %20 : vector<1x256xi1> to vector<1x256xi1>
    %46 = vector.broadcast %45 : vector<1x256xi1> to vector<4x256xi1>
    %47 = vector.broadcast %cst_18 : f32 to vector<4x256xf32>
    %48 = arith.select %46, %44, %47 : vector<4x256xi1>, vector<4x256xf32>
    %c0_19 = arith.constant 0 : index
    %c0_20 = arith.constant 0 : index
    %c32 = arith.constant 32 : index
    %49 = vector.load %arg1[%c0_19, %c0_20, %c32] : memref<1x4x290xf32, #tpu.memory_space<vmem>>, vector<1x4x256xf32>
    %50 = vector.shape_cast %49 : vector<1x4x256xf32> to vector<4x256xf32>
    %cst_21 = arith.constant 0.000000e+00 : f32
    %51 = vector.shape_cast %18 : vector<1x256xi1> to vector<1x256xi1>
    %52 = vector.broadcast %51 : vector<1x256xi1> to vector<4x256xi1>
    %53 = vector.broadcast %cst_21 : f32 to vector<4x256xf32>
    %54 = arith.select %52, %50, %53 : vector<4x256xi1>, vector<4x256xf32>
    %c0_22 = arith.constant 0 : index
    %c0_23 = arith.constant 0 : index
    %c33 = arith.constant 33 : index
    %55 = vector.load %arg1[%c0_22, %c0_23, %c33] : memref<1x4x290xf32, #tpu.memory_space<vmem>>, vector<1x4x256xf32>
    %56 = vector.shape_cast %55 : vector<1x4x256xf32> to vector<4x256xf32>
    %c0_24 = arith.constant 0 : index
    %c0_25 = arith.constant 0 : index
    %c34 = arith.constant 34 : index
    %57 = vector.load %arg1[%c0_24, %c0_25, %c34] : memref<1x4x290xf32, #tpu.memory_space<vmem>>, vector<1x4x256xf32>
    %58 = vector.shape_cast %57 : vector<1x4x256xf32> to vector<4x256xf32>
    %cst_26 = arith.constant 0.000000e+00 : f32
    %59 = vector.shape_cast %20 : vector<1x256xi1> to vector<1x256xi1>
    %60 = vector.broadcast %59 : vector<1x256xi1> to vector<4x256xi1>
    %61 = vector.broadcast %cst_26 : f32 to vector<4x256xf32>
    %62 = arith.select %60, %58, %61 : vector<4x256xi1>, vector<4x256xf32>
    %63 = tpu.concatenate %26, %28, %40, %42 in 0 : vector<4x256xf32>, vector<4x256xf32>, vector<4x256xf32>, vector<4x256xf32> -> vector<16x256xf32>
    %c0_27 = arith.constant 0 : index
    %c0_28 = arith.constant 0 : index
    %c0_29 = arith.constant 0 : index
    %64 = vector.load %arg2[%c0_27, %c0_28, %c0_29] : memref<4x8x16xf32, #tpu.memory_space<vmem>>, vector<1x8x16xf32>
    %65 = vector.shape_cast %64 : vector<1x8x16xf32> to vector<8x16xf32>
    %cst_30 = arith.constant dense<0.000000e+00> : vector<8x256xf32>
    %66 = tpu.matmul %65, %63, %cst_30 {dimension_numbers = #tpu.dot_dimension_numbers<[1], [0], [0], [1], [0, 0, 1, 1], [], []>} : vector<8x16xf32>, vector<16x256xf32>, vector<8x256xf32> -> vector<8x256xf32>
    %67 = tpu.concatenate %28, %34, %42, %48 in 0 : vector<4x256xf32>, vector<4x256xf32>, vector<4x256xf32>, vector<4x256xf32> -> vector<16x256xf32>
    %c1_31 = arith.constant 1 : index
    %c0_32 = arith.constant 0 : index
    %c0_33 = arith.constant 0 : index
    %68 = vector.load %arg2[%c1_31, %c0_32, %c0_33] : memref<4x8x16xf32, #tpu.memory_space<vmem>>, vector<1x8x16xf32>
    %69 = vector.shape_cast %68 : vector<1x8x16xf32> to vector<8x16xf32>
    %cst_34 = arith.constant dense<0.000000e+00> : vector<8x256xf32>
    %70 = tpu.matmul %69, %67, %cst_34 {dimension_numbers = #tpu.dot_dimension_numbers<[1], [0], [0], [1], [0, 0, 1, 1], [], []>} : vector<8x16xf32>, vector<16x256xf32>, vector<8x256xf32> -> vector<8x256xf32>
    %71 = tpu.concatenate %40, %42, %54, %56 in 0 : vector<4x256xf32>, vector<4x256xf32>, vector<4x256xf32>, vector<4x256xf32> -> vector<16x256xf32>
    %c2_35 = arith.constant 2 : index
    %c0_36 = arith.constant 0 : index
    %c0_37 = arith.constant 0 : index
    %72 = vector.load %arg2[%c2_35, %c0_36, %c0_37] : memref<4x8x16xf32, #tpu.memory_space<vmem>>, vector<1x8x16xf32>
    %73 = vector.shape_cast %72 : vector<1x8x16xf32> to vector<8x16xf32>
    %cst_38 = arith.constant dense<0.000000e+00> : vector<8x256xf32>
    %74 = tpu.matmul %73, %71, %cst_38 {dimension_numbers = #tpu.dot_dimension_numbers<[1], [0], [0], [1], [0, 0, 1, 1], [], []>} : vector<8x16xf32>, vector<16x256xf32>, vector<8x256xf32> -> vector<8x256xf32>
    %75 = tpu.concatenate %42, %48, %56, %62 in 0 : vector<4x256xf32>, vector<4x256xf32>, vector<4x256xf32>, vector<4x256xf32> -> vector<16x256xf32>
    %c3 = arith.constant 3 : index
    %c0_39 = arith.constant 0 : index
    %c0_40 = arith.constant 0 : index
    %76 = vector.load %arg2[%c3, %c0_39, %c0_40] : memref<4x8x16xf32, #tpu.memory_space<vmem>>, vector<1x8x16xf32>
    %77 = vector.shape_cast %76 : vector<1x8x16xf32> to vector<8x16xf32>
    %cst_41 = arith.constant dense<0.000000e+00> : vector<8x256xf32>
    %78 = tpu.matmul %77, %75, %cst_41 {dimension_numbers = #tpu.dot_dimension_numbers<[1], [0], [0], [1], [0, 0, 1, 1], [], []>} : vector<8x16xf32>, vector<16x256xf32>, vector<8x256xf32> -> vector<8x256xf32>
    %cst_42 = arith.constant dense<0.000000e+00> : vector<8xf32>
    %79 = vector.multi_reduction <add>, %66, %cst_42 [1] : vector<8x256xf32> to vector<8xf32>
    %80 = vector.shape_cast %79 : vector<8xf32> to vector<8x1xf32>
    %cst_43 = arith.constant 0.000000e+00 : f32
    %81 = vector.broadcast %cst_43 : f32 to vector<8x1xf32>
    %82 = arith.addf %81, %80 : vector<8x1xf32>
    %cst_44 = arith.constant dense<0.000000e+00> : vector<8xf32>
    %83 = vector.multi_reduction <add>, %70, %cst_44 [1] : vector<8x256xf32> to vector<8xf32>
    %84 = vector.shape_cast %83 : vector<8xf32> to vector<8x1xf32>
    %85 = arith.addf %82, %84 : vector<8x1xf32>
    %cst_45 = arith.constant dense<0.000000e+00> : vector<8xf32>
    %86 = vector.multi_reduction <add>, %74, %cst_45 [1] : vector<8x256xf32> to vector<8xf32>
    %87 = vector.shape_cast %86 : vector<8xf32> to vector<8x1xf32>
    %88 = arith.addf %85, %87 : vector<8x1xf32>
    %cst_46 = arith.constant dense<0.000000e+00> : vector<8xf32>
    %89 = vector.multi_reduction <add>, %78, %cst_46 [1] : vector<8x256xf32> to vector<8xf32>
    %90 = vector.shape_cast %89 : vector<8xf32> to vector<8x1xf32>
    %91 = arith.addf %88, %90 : vector<8x1xf32>
    %92 = arith.mulf %66, %66 : vector<8x256xf32>
    %cst_47 = arith.constant dense<0.000000e+00> : vector<8xf32>
    %93 = vector.multi_reduction <add>, %92, %cst_47 [1] : vector<8x256xf32> to vector<8xf32>
    %94 = vector.shape_cast %93 : vector<8xf32> to vector<8x1xf32>
    %cst_48 = arith.constant 0.000000e+00 : f32
    %95 = vector.broadcast %cst_48 : f32 to vector<8x1xf32>
    %96 = arith.addf %95, %94 : vector<8x1xf32>
    %97 = arith.mulf %70, %70 : vector<8x256xf32>
    %cst_49 = arith.constant dense<0.000000e+00> : vector<8xf32>
    %98 = vector.multi_reduction <add>, %97, %cst_49 [1] : vector<8x256xf32> to vector<8xf32>
    %99 = vector.shape_cast %98 : vector<8xf32> to vector<8x1xf32>
    %100 = arith.addf %96, %99 : vector<8x1xf32>
    %101 = arith.mulf %74, %74 : vector<8x256xf32>
    %cst_50 = arith.constant dense<0.000000e+00> : vector<8xf32>
    %102 = vector.multi_reduction <add>, %101, %cst_50 [1] : vector<8x256xf32> to vector<8xf32>
    %103 = vector.shape_cast %102 : vector<8xf32> to vector<8x1xf32>
    %104 = arith.addf %100, %103 : vector<8x1xf32>
    %105 = arith.mulf %78, %78 : vector<8x256xf32>
    %cst_51 = arith.constant dense<0.000000e+00> : vector<8xf32>
    %106 = vector.multi_reduction <add>, %105, %cst_51 [1] : vector<8x256xf32> to vector<8xf32>
    %107 = vector.shape_cast %106 : vector<8xf32> to vector<8x1xf32>
    %108 = arith.addf %104, %107 : vector<8x1xf32>
    %109 = tpu.concatenate %91, %108 in 1 : vector<8x1xf32>, vector<8x1xf32> -> vector<8x2xf32>
    %c0_52 = arith.constant 0 : index
    %c0_53 = arith.constant 0 : index
    %c0_54 = arith.constant 0 : index
    %110 = vector.load %arg3[%c0_52, %c0_53, %c0_54] : memref<1x8x2xf32, #tpu.memory_space<vmem>>, vector<1x8x2xf32>
    %111 = vector.shape_cast %110 : vector<1x8x2xf32> to vector<8x2xf32>
    %112 = vector.shape_cast %109 : vector<8x2xf32> to vector<1x8x2xf32>
    tpu.vector_store %arg3[%c0_52, %c0_53, %c0_54], %112 {strides = array<i32>} : memref<1x8x2xf32, #tpu.memory_space<vmem>>, vector<1x8x2xf32>,
    return
  }
  func.func @transform_0(%arg0: i32) -> (i32, i32, i32) {
    %c0_i32 = arith.constant 0 : i32
    %c0_i32_0 = arith.constant 0 : i32
    %c0_i32_1 = arith.constant 0 : i32
    return %arg0, %c0_i32, %c0_i32_0 : i32, i32, i32
  }
  func.func @transform_1(%arg0: i32) -> (i32, i32, i32) {
    %c0_i32 = arith.constant 0 : i32
    %c0_i32_0 = arith.constant 0 : i32
    %c0_i32_1 = arith.constant 0 : i32
    %c0_i32_2 = arith.constant 0 : i32
    return %c0_i32, %c0_i32_0, %c0_i32_1 : i32, i32, i32
  }
  func.func @transform_2(%arg0: i32) -> (i32, i32, i32) {
    %c0_i32 = arith.constant 0 : i32
    %c0_i32_0 = arith.constant 0 : i32
    %c0_i32_1 = arith.constant 0 : i32
    return %arg0, %c0_i32, %c0_i32_0 : i32, i32, i32
  }
}

module attributes {stable_mosaic.version = 11 : i64} {
  func.func @apply_kernel(%arg0: i32, %arg1: memref<1x4x290xf32, #tpu.memory_space<vmem>>, %arg2: memref<4x8x16xf32, #tpu.memory_space<vmem>>, %arg3: memref<8x1xf32, #tpu.memory_space<vmem>>, %arg4: memref<8x1xf32, #tpu.memory_space<vmem>>, %arg5: memref<1x4x4x256xf32, #tpu.memory_space<vmem>>) attributes {dimension_semantics = [#tpu.dimension_semantics<parallel>], iteration_bounds = array<i64: 2>, scalar_prefetch = 0 : i64, scratch_operands = 0 : i64, tpu.core_type = #tpu.core_type<tc>, window_params = [{transform_indices = @transform_0, window_bounds = array<i64: 1, 4, 290>}, {pipeline_mode = #tpu.pipeline_mode<synchronous>, transform_indices = @transform_1, window_bounds = array<i64: 4, 8, 16>}, {pipeline_mode = #tpu.pipeline_mode<synchronous>, transform_indices = @transform_2, window_bounds = array<i64: 8, 1>}, {pipeline_mode = #tpu.pipeline_mode<synchronous>, transform_indices = @transform_3, window_bounds = array<i64: 8, 1>}, {transform_indices = @transform_4, window_bounds = array<i64: 1, 4, 4, 256>}]} {
    %0 = tpu.iota {dimensions = array<i32: 1>} : vector<1x256xi32>
    %c16_i32 = arith.constant 16 : i32
    %c0_i32 = arith.constant 0 : i32
    %1 = arith.cmpi eq, %c16_i32, %c0_i32 : i32
    %c1_i32 = arith.constant 1 : i32
    %2 = arith.select %1, %c1_i32, %c16_i32 : i32
    %3 = vector.broadcast %2 : i32 to vector<1x256xi32>
    %4 = arith.remsi %0, %3 : vector<1x256xi32>
    %c0_i32_0 = arith.constant 0 : i32
    %5 = vector.broadcast %c0_i32_0 : i32 to vector<1x256xi32>
    %6 = arith.cmpi ne, %4, %5 : vector<1x256xi32>
    %c0_i32_1 = arith.constant 0 : i32
    %7 = vector.broadcast %c0_i32_1 : i32 to vector<1x256xi32>
    %8 = arith.cmpi slt, %4, %7 : vector<1x256xi32>
    %c0_i32_2 = arith.constant 0 : i32
    %9 = arith.cmpi slt, %2, %c0_i32_2 : i32
    %10 = vector.broadcast %9 : i1 to vector<1x256xi1>
    %11 = vector.broadcast %10 : vector<1x256xi1> to vector<1x256xi1>
    %12 = arith.xori %8, %11 : vector<1x256xi1>
    %13 = arith.andi %12, %6 : vector<1x256xi1>
    %14 = vector.broadcast %2 : i32 to vector<1x256xi32>
    %15 = arith.addi %4, %14 : vector<1x256xi32>
    %16 = arith.select %13, %15, %4 : vector<1x256xi1>, vector<1x256xi32>
    %c1_i32_3 = arith.constant 1 : i32
    %17 = vector.broadcast %c1_i32_3 : i32 to vector<1x256xi32>
    %18 = arith.cmpi sge, %16, %17 : vector<1x256xi32>
    %c14_i32 = arith.constant 14 : i32
    %19 = vector.broadcast %c14_i32 : i32 to vector<1x256xi32>
    %20 = arith.cmpi sle, %16, %19 : vector<1x256xi32>
    %c0 = arith.constant 0 : index
    %c0_4 = arith.constant 0 : index
    %c0_5 = arith.constant 0 : index
    %21 = vector.load %arg1[%c0, %c0_4, %c0_5] : memref<1x4x290xf32, #tpu.memory_space<vmem>>, vector<1x4x256xf32>
    %22 = vector.shape_cast %21 : vector<1x4x256xf32> to vector<4x256xf32>
    %cst = arith.constant 0.000000e+00 : f32
    %23 = vector.shape_cast %18 : vector<1x256xi1> to vector<1x256xi1>
    %24 = vector.broadcast %23 : vector<1x256xi1> to vector<4x256xi1>
    %25 = vector.broadcast %cst : f32 to vector<4x256xf32>
    %26 = arith.select %24, %22, %25 : vector<4x256xi1>, vector<4x256xf32>
    %c0_6 = arith.constant 0 : index
    %c0_7 = arith.constant 0 : index
    %c1 = arith.constant 1 : index
    %27 = vector.load %arg1[%c0_6, %c0_7, %c1] : memref<1x4x290xf32, #tpu.memory_space<vmem>>, vector<1x4x256xf32>
    %28 = vector.shape_cast %27 : vector<1x4x256xf32> to vector<4x256xf32>
    %c0_8 = arith.constant 0 : index
    %c0_9 = arith.constant 0 : index
    %c2 = arith.constant 2 : index
    %29 = vector.load %arg1[%c0_8, %c0_9, %c2] : memref<1x4x290xf32, #tpu.memory_space<vmem>>, vector<1x4x256xf32>
    %30 = vector.shape_cast %29 : vector<1x4x256xf32> to vector<4x256xf32>
    %cst_10 = arith.constant 0.000000e+00 : f32
    %31 = vector.shape_cast %20 : vector<1x256xi1> to vector<1x256xi1>
    %32 = vector.broadcast %31 : vector<1x256xi1> to vector<4x256xi1>
    %33 = vector.broadcast %cst_10 : f32 to vector<4x256xf32>
    %34 = arith.select %32, %30, %33 : vector<4x256xi1>, vector<4x256xf32>
    %c0_11 = arith.constant 0 : index
    %c0_12 = arith.constant 0 : index
    %c16 = arith.constant 16 : index
    %35 = vector.load %arg1[%c0_11, %c0_12, %c16] : memref<1x4x290xf32, #tpu.memory_space<vmem>>, vector<1x4x256xf32>
    %36 = vector.shape_cast %35 : vector<1x4x256xf32> to vector<4x256xf32>
    %cst_13 = arith.constant 0.000000e+00 : f32
    %37 = vector.shape_cast %18 : vector<1x256xi1> to vector<1x256xi1>
    %38 = vector.broadcast %37 : vector<1x256xi1> to vector<4x256xi1>
    %39 = vector.broadcast %cst_13 : f32 to vector<4x256xf32>
    %40 = arith.select %38, %36, %39 : vector<4x256xi1>, vector<4x256xf32>
    %c0_14 = arith.constant 0 : index
    %c0_15 = arith.constant 0 : index
    %c17 = arith.constant 17 : index
    %41 = vector.load %arg1[%c0_14, %c0_15, %c17] : memref<1x4x290xf32, #tpu.memory_space<vmem>>, vector<1x4x256xf32>
    %42 = vector.shape_cast %41 : vector<1x4x256xf32> to vector<4x256xf32>
    %c0_16 = arith.constant 0 : index
    %c0_17 = arith.constant 0 : index
    %c18 = arith.constant 18 : index
    %43 = vector.load %arg1[%c0_16, %c0_17, %c18] : memref<1x4x290xf32, #tpu.memory_space<vmem>>, vector<1x4x256xf32>
    %44 = vector.shape_cast %43 : vector<1x4x256xf32> to vector<4x256xf32>
    %cst_18 = arith.constant 0.000000e+00 : f32
    %45 = vector.shape_cast %20 : vector<1x256xi1> to vector<1x256xi1>
    %46 = vector.broadcast %45 : vector<1x256xi1> to vector<4x256xi1>
    %47 = vector.broadcast %cst_18 : f32 to vector<4x256xf32>
    %48 = arith.select %46, %44, %47 : vector<4x256xi1>, vector<4x256xf32>
    %c0_19 = arith.constant 0 : index
    %c0_20 = arith.constant 0 : index
    %c32 = arith.constant 32 : index
    %49 = vector.load %arg1[%c0_19, %c0_20, %c32] : memref<1x4x290xf32, #tpu.memory_space<vmem>>, vector<1x4x256xf32>
    %50 = vector.shape_cast %49 : vector<1x4x256xf32> to vector<4x256xf32>
    %cst_21 = arith.constant 0.000000e+00 : f32
    %51 = vector.shape_cast %18 : vector<1x256xi1> to vector<1x256xi1>
    %52 = vector.broadcast %51 : vector<1x256xi1> to vector<4x256xi1>
    %53 = vector.broadcast %cst_21 : f32 to vector<4x256xf32>
    %54 = arith.select %52, %50, %53 : vector<4x256xi1>, vector<4x256xf32>
    %c0_22 = arith.constant 0 : index
    %c0_23 = arith.constant 0 : index
    %c33 = arith.constant 33 : index
    %55 = vector.load %arg1[%c0_22, %c0_23, %c33] : memref<1x4x290xf32, #tpu.memory_space<vmem>>, vector<1x4x256xf32>
    %56 = vector.shape_cast %55 : vector<1x4x256xf32> to vector<4x256xf32>
    %c0_24 = arith.constant 0 : index
    %c0_25 = arith.constant 0 : index
    %c34 = arith.constant 34 : index
    %57 = vector.load %arg1[%c0_24, %c0_25, %c34] : memref<1x4x290xf32, #tpu.memory_space<vmem>>, vector<1x4x256xf32>
    %58 = vector.shape_cast %57 : vector<1x4x256xf32> to vector<4x256xf32>
    %cst_26 = arith.constant 0.000000e+00 : f32
    %59 = vector.shape_cast %20 : vector<1x256xi1> to vector<1x256xi1>
    %60 = vector.broadcast %59 : vector<1x256xi1> to vector<4x256xi1>
    %61 = vector.broadcast %cst_26 : f32 to vector<4x256xf32>
    %62 = arith.select %60, %58, %61 : vector<4x256xi1>, vector<4x256xf32>
    %63 = tpu.concatenate %26, %28, %40, %42 in 0 : vector<4x256xf32>, vector<4x256xf32>, vector<4x256xf32>, vector<4x256xf32> -> vector<16x256xf32>
    %c0_27 = arith.constant 0 : index
    %c0_28 = arith.constant 0 : index
    %c0_29 = arith.constant 0 : index
    %64 = vector.load %arg2[%c0_27, %c0_28, %c0_29] : memref<4x8x16xf32, #tpu.memory_space<vmem>>, vector<1x8x16xf32>
    %65 = vector.shape_cast %64 : vector<1x8x16xf32> to vector<8x16xf32>
    %cst_30 = arith.constant dense<0.000000e+00> : vector<8x256xf32>
    %66 = tpu.matmul %65, %63, %cst_30 {dimension_numbers = #tpu.dot_dimension_numbers<[1], [0], [0], [1], [0, 0, 1, 1], [], []>} : vector<8x16xf32>, vector<16x256xf32>, vector<8x256xf32> -> vector<8x256xf32>
    %67 = tpu.concatenate %28, %34, %42, %48 in 0 : vector<4x256xf32>, vector<4x256xf32>, vector<4x256xf32>, vector<4x256xf32> -> vector<16x256xf32>
    %c1_31 = arith.constant 1 : index
    %c0_32 = arith.constant 0 : index
    %c0_33 = arith.constant 0 : index
    %68 = vector.load %arg2[%c1_31, %c0_32, %c0_33] : memref<4x8x16xf32, #tpu.memory_space<vmem>>, vector<1x8x16xf32>
    %69 = vector.shape_cast %68 : vector<1x8x16xf32> to vector<8x16xf32>
    %cst_34 = arith.constant dense<0.000000e+00> : vector<8x256xf32>
    %70 = tpu.matmul %69, %67, %cst_34 {dimension_numbers = #tpu.dot_dimension_numbers<[1], [0], [0], [1], [0, 0, 1, 1], [], []>} : vector<8x16xf32>, vector<16x256xf32>, vector<8x256xf32> -> vector<8x256xf32>
    %71 = tpu.concatenate %40, %42, %54, %56 in 0 : vector<4x256xf32>, vector<4x256xf32>, vector<4x256xf32>, vector<4x256xf32> -> vector<16x256xf32>
    %c2_35 = arith.constant 2 : index
    %c0_36 = arith.constant 0 : index
    %c0_37 = arith.constant 0 : index
    %72 = vector.load %arg2[%c2_35, %c0_36, %c0_37] : memref<4x8x16xf32, #tpu.memory_space<vmem>>, vector<1x8x16xf32>
    %73 = vector.shape_cast %72 : vector<1x8x16xf32> to vector<8x16xf32>
    %cst_38 = arith.constant dense<0.000000e+00> : vector<8x256xf32>
    %74 = tpu.matmul %73, %71, %cst_38 {dimension_numbers = #tpu.dot_dimension_numbers<[1], [0], [0], [1], [0, 0, 1, 1], [], []>} : vector<8x16xf32>, vector<16x256xf32>, vector<8x256xf32> -> vector<8x256xf32>
    %75 = tpu.concatenate %42, %48, %56, %62 in 0 : vector<4x256xf32>, vector<4x256xf32>, vector<4x256xf32>, vector<4x256xf32> -> vector<16x256xf32>
    %c3 = arith.constant 3 : index
    %c0_39 = arith.constant 0 : index
    %c0_40 = arith.constant 0 : index
    %76 = vector.load %arg2[%c3, %c0_39, %c0_40] : memref<4x8x16xf32, #tpu.memory_space<vmem>>, vector<1x8x16xf32>
    %77 = vector.shape_cast %76 : vector<1x8x16xf32> to vector<8x16xf32>
    %cst_41 = arith.constant dense<0.000000e+00> : vector<8x256xf32>
    %78 = tpu.matmul %77, %75, %cst_41 {dimension_numbers = #tpu.dot_dimension_numbers<[1], [0], [0], [1], [0, 0, 1, 1], [], []>} : vector<8x16xf32>, vector<16x256xf32>, vector<8x256xf32> -> vector<8x256xf32>
    %c0_42 = arith.constant 0 : index
    %c0_43 = arith.constant 0 : index
    %79 = vector.load %arg3[%c0_42, %c0_43] : memref<8x1xf32, #tpu.memory_space<vmem>>, vector<8x1xf32>
    %c0_44 = arith.constant 0 : index
    %c0_45 = arith.constant 0 : index
    %80 = vector.load %arg4[%c0_44, %c0_45] : memref<8x1xf32, #tpu.memory_space<vmem>>, vector<8x1xf32>
    %81 = vector.broadcast %79 : vector<8x1xf32> to vector<8x256xf32>
    %82 = arith.mulf %66, %81 : vector<8x256xf32>
    %83 = vector.broadcast %80 : vector<8x1xf32> to vector<8x256xf32>
    %84 = arith.addf %82, %83 : vector<8x256xf32>
    %85 = vector.extract_strided_slice %84 {offsets = [0, 0], sizes = [4, 256], strides = [1, 1]} : vector<8x256xf32> to vector<4x256xf32>
    %86 = vector.extract_strided_slice %84 {offsets = [4, 0], sizes = [4, 256], strides = [1, 1]} : vector<8x256xf32> to vector<4x256xf32>
    %87 = arith.negf %86 : vector<4x256xf32>
    %88 = math.exp %87 : vector<4x256xf32>
    %cst_46 = arith.constant 1.000000e+00 : f32
    %89 = vector.broadcast %cst_46 : f32 to vector<4x256xf32>
    %90 = arith.addf %89, %88 : vector<4x256xf32>
    %91 = arith.divf %89, %90 : vector<4x256xf32>
    %92 = arith.mulf %85, %91 : vector<4x256xf32>
    %c0_47 = arith.constant 0 : index
    %c0_48 = arith.constant 0 : index
    %c0_49 = arith.constant 0 : index
    %c0_50 = arith.constant 0 : index
    %93 = vector.load %arg5[%c0_47, %c0_48, %c0_49, %c0_50] : memref<1x4x4x256xf32, #tpu.memory_space<vmem>>, vector<1x1x4x256xf32>
    %94 = vector.shape_cast %93 : vector<1x1x4x256xf32> to vector<4x256xf32>
    %95 = vector.shape_cast %92 : vector<4x256xf32> to vector<1x1x4x256xf32>
    tpu.vector_store %arg5[%c0_47, %c0_48, %c0_49, %c0_50], %95 {strides = array<i32>} : memref<1x4x4x256xf32, #tpu.memory_space<vmem>>, vector<1x1x4x256xf32>,
    %96 = vector.broadcast %79 : vector<8x1xf32> to vector<8x256xf32>
    %97 = arith.mulf %70, %96 : vector<8x256xf32>
    %98 = vector.broadcast %80 : vector<8x1xf32> to vector<8x256xf32>
    %99 = arith.addf %97, %98 : vector<8x256xf32>
    %100 = vector.extract_strided_slice %99 {offsets = [0, 0], sizes = [4, 256], strides = [1, 1]} : vector<8x256xf32> to vector<4x256xf32>
    %101 = vector.extract_strided_slice %99 {offsets = [4, 0], sizes = [4, 256], strides = [1, 1]} : vector<8x256xf32> to vector<4x256xf32>
    %102 = arith.negf %101 : vector<4x256xf32>
    %103 = math.exp %102 : vector<4x256xf32>
    %cst_51 = arith.constant 1.000000e+00 : f32
    %104 = vector.broadcast %cst_51 : f32 to vector<4x256xf32>
    %105 = arith.addf %104, %103 : vector<4x256xf32>
    %106 = arith.divf %104, %105 : vector<4x256xf32>
    %107 = arith.mulf %100, %106 : vector<4x256xf32>
    %c0_52 = arith.constant 0 : index
    %c1_53 = arith.constant 1 : index
    %c0_54 = arith.constant 0 : index
    %c0_55 = arith.constant 0 : index
    %108 = vector.load %arg5[%c0_52, %c1_53, %c0_54, %c0_55] : memref<1x4x4x256xf32, #tpu.memory_space<vmem>>, vector<1x1x4x256xf32>
    %109 = vector.shape_cast %108 : vector<1x1x4x256xf32> to vector<4x256xf32>
    %110 = vector.shape_cast %107 : vector<4x256xf32> to vector<1x1x4x256xf32>
    tpu.vector_store %arg5[%c0_52, %c1_53, %c0_54, %c0_55], %110 {strides = array<i32>} : memref<1x4x4x256xf32, #tpu.memory_space<vmem>>, vector<1x1x4x256xf32>,
    %111 = vector.broadcast %79 : vector<8x1xf32> to vector<8x256xf32>
    %112 = arith.mulf %74, %111 : vector<8x256xf32>
    %113 = vector.broadcast %80 : vector<8x1xf32> to vector<8x256xf32>
    %114 = arith.addf %112, %113 : vector<8x256xf32>
    %115 = vector.extract_strided_slice %114 {offsets = [0, 0], sizes = [4, 256], strides = [1, 1]} : vector<8x256xf32> to vector<4x256xf32>
    %116 = vector.extract_strided_slice %114 {offsets = [4, 0], sizes = [4, 256], strides = [1, 1]} : vector<8x256xf32> to vector<4x256xf32>
    %117 = arith.negf %116 : vector<4x256xf32>
    %118 = math.exp %117 : vector<4x256xf32>
    %cst_56 = arith.constant 1.000000e+00 : f32
    %119 = vector.broadcast %cst_56 : f32 to vector<4x256xf32>
    %120 = arith.addf %119, %118 : vector<4x256xf32>
    %121 = arith.divf %119, %120 : vector<4x256xf32>
    %122 = arith.mulf %115, %121 : vector<4x256xf32>
    %c0_57 = arith.constant 0 : index
    %c2_58 = arith.constant 2 : index
    %c0_59 = arith.constant 0 : index
    %c0_60 = arith.constant 0 : index
    %123 = vector.load %arg5[%c0_57, %c2_58, %c0_59, %c0_60] : memref<1x4x4x256xf32, #tpu.memory_space<vmem>>, vector<1x1x4x256xf32>
    %124 = vector.shape_cast %123 : vector<1x1x4x256xf32> to vector<4x256xf32>
    %125 = vector.shape_cast %122 : vector<4x256xf32> to vector<1x1x4x256xf32>
    tpu.vector_store %arg5[%c0_57, %c2_58, %c0_59, %c0_60], %125 {strides = array<i32>} : memref<1x4x4x256xf32, #tpu.memory_space<vmem>>, vector<1x1x4x256xf32>,
    %126 = vector.broadcast %79 : vector<8x1xf32> to vector<8x256xf32>
    %127 = arith.mulf %78, %126 : vector<8x256xf32>
    %128 = vector.broadcast %80 : vector<8x1xf32> to vector<8x256xf32>
    %129 = arith.addf %127, %128 : vector<8x256xf32>
    %130 = vector.extract_strided_slice %129 {offsets = [0, 0], sizes = [4, 256], strides = [1, 1]} : vector<8x256xf32> to vector<4x256xf32>
    %131 = vector.extract_strided_slice %129 {offsets = [4, 0], sizes = [4, 256], strides = [1, 1]} : vector<8x256xf32> to vector<4x256xf32>
    %132 = arith.negf %131 : vector<4x256xf32>
    %133 = math.exp %132 : vector<4x256xf32>
    %cst_61 = arith.constant 1.000000e+00 : f32
    %134 = vector.broadcast %cst_61 : f32 to vector<4x256xf32>
    %135 = arith.addf %134, %133 : vector<4x256xf32>
    %136 = arith.divf %134, %135 : vector<4x256xf32>
    %137 = arith.mulf %130, %136 : vector<4x256xf32>
    %c0_62 = arith.constant 0 : index
    %c3_63 = arith.constant 3 : index
    %c0_64 = arith.constant 0 : index
    %c0_65 = arith.constant 0 : index
    %138 = vector.load %arg5[%c0_62, %c3_63, %c0_64, %c0_65] : memref<1x4x4x256xf32, #tpu.memory_space<vmem>>, vector<1x1x4x256xf32>
    %139 = vector.shape_cast %138 : vector<1x1x4x256xf32> to vector<4x256xf32>
    %140 = vector.shape_cast %137 : vector<4x256xf32> to vector<1x1x4x256xf32>
    tpu.vector_store %arg5[%c0_62, %c3_63, %c0_64, %c0_65], %140 {strides = array<i32>} : memref<1x4x4x256xf32, #tpu.memory_space<vmem>>, vector<1x1x4x256xf32>,
    return
  }
  func.func @transform_0(%arg0: i32) -> (i32, i32, i32) {
    %c0_i32 = arith.constant 0 : i32
    %c0_i32_0 = arith.constant 0 : i32
    %c0_i32_1 = arith.constant 0 : i32
    return %arg0, %c0_i32, %c0_i32_0 : i32, i32, i32
  }
  func.func @transform_1(%arg0: i32) -> (i32, i32, i32) {
    %c0_i32 = arith.constant 0 : i32
    %c0_i32_0 = arith.constant 0 : i32
    %c0_i32_1 = arith.constant 0 : i32
    %c0_i32_2 = arith.constant 0 : i32
    return %c0_i32, %c0_i32_0, %c0_i32_1 : i32, i32, i32
  }
  func.func @transform_2(%arg0: i32) -> (i32, i32) {
    %c0_i32 = arith.constant 0 : i32
    %c0_i32_0 = arith.constant 0 : i32
    %c0_i32_1 = arith.constant 0 : i32
    return %c0_i32, %c0_i32_0 : i32, i32
  }
  func.func @transform_3(%arg0: i32) -> (i32, i32) {
    %c0_i32 = arith.constant 0 : i32
    %c0_i32_0 = arith.constant 0 : i32
    %c0_i32_1 = arith.constant 0 : i32
    return %c0_i32, %c0_i32_0 : i32, i32
  }
  func.func @transform_4(%arg0: i32) -> (i32, i32, i32, i32) {
    %c0_i32 = arith.constant 0 : i32
    %c0_i32_0 = arith.constant 0 : i32
    %c0_i32_1 = arith.constant 0 : i32
    %c0_i32_2 = arith.constant 0 : i32
    return %arg0, %c0_i32, %c0_i32_0, %c0_i32_1 : i32, i32, i32, i32
  }
}

</mosaic_0001>

<bundles_post_ra>
// kernel: upblock_forward.3
= control target key start
LH: loop header
LB: loop body
LE: loop exit
PB: predicated region body
PF: predicated region fallthrough
CT: control target
= control target key end

     0   :  { %s1085_s15 = smov 0   ;;  %s1305_s0 = inlined_call_operand.vmem [shape: f32[2,4,290], index: 0, kind: input, shape index: {}]   ;;  %s1306_s1 = inlined_call_operand.vmem [shape: f32[4,8,16], index: 1, kind: input, shape index: {}]   ;;  %s1307_s2 = inlined_call_operand.vmem [shape: f32[8,1], index: 2, kind: input, shape index: {}]   ;;  %s1308_s3 = inlined_call_operand.vmem [shape: f32[8,1], index: 3, kind: input, shape index: {}]   ;;  %s1309_s4 = inlined_call_operand.vmem [shape: f32[2,4,4,256], index: 4, kind: output, shape index: {}]  }
   0x1 LB: > { %s953_s16 = sadd.s32 4294967295, %s1046_s15   ;;  %p957_p0 = scmp.ge.s32.totalorder %s1046_s15, 1  ;;  %s1046_s15 = sphi %s1085_s15, %s14_s15  }
   0x2   : > { %p162_p1 = scmp.lt.s32.totalorder %s1046_s15, 3 }
   0x4   : > { %p163_p2 = pnand %p957_p0, %p162_p1 }
   0x5   : > { %p188_p3 = scmp.lt.s32.totalorder (!%p163_p2), %s953_s16, 1  ;;  %s1048_s21 = smov (!%p163_p2), 110  }
   0x6   : > { %166 = sbr.rel (%p163_p2) target bundleno = 638 (0x27e), region = 36  ;;  %s1049_s22 = smov (!%p163_p2), 126  }
   0x7   : > { %s1050_s23 = smov (!%p163_p2), 94   ;;  %s1051_s24 = smov (!%p163_p2), 112  }
   0x8   : > { %s1052_s25 = smov (!%p163_p2), 1   ;;  %s1053_s26 = smov (!%p163_p2), 17  }
   0x9   : > { %s1054_s27 = smov (!%p163_p2), 111   ;;  %s1055_s28 = smov (!%p163_p2), 127  }
   0xa   : > { %s1056_s29 = smov (!%p163_p2), 96   ;;  %s1058_s30 = smov (!%p163_p2), 95  }
   0xb   : > { %s1319_s16 = smov (!%p188_p3, %s953_s16), 1  ;;  %v198_v3 = vlaneseq  ;;  %vm277_vm0 = vcmask 900096   ;;  %vm251_vm3 = vcmask 1031168   ;;  %vm303_vm4 = vcmask 769024  }
   0xc   : > { %s982_s17 = smul.u32 12, %s1319_s16  ;;  %v1057_v39 = vmov 0.0   ;;  %vm264_vm5 = vcmask 916480   ;;  %vm334_vm6 = vcmask 1043456   ;;  %vm423_vm7 = vcmask 7168   ;;  %s981_s19 = sshll.u32 %s1319_s16, 5 }
   0xd   : > { %v1119_v4 = vand.u32 127, %v198_v3  ;;  %408 = vmatprep.mubr.f32.mxu0 %v1057_v39  ;;  %542 = vmatprep.mubr.f32.mxu1 %v1057_v39  ;;  %vm642_vm8 = vcmask 138240   ;;  %vm329_vm11 = vcmask 908288   ;;  %vm318_vm12 = vcmask 1039360  }
   0xe   : > { %s192_s20 = scalar_lea.vmem %s1305_s0, %s982_s17  ;;  %vm290_vm13 = vcmask 785408   ;;  %vm340_vm14 = vcmask 130048   ;;  %vm555_vm15 = vcmask 777216  }
   0xf   : > { %v1099_v0 = vld [vmem:[%s192_s20 + $0x8] sm:$0xf]  ;;  %v1101_v1 = vld [vmem:[%s192_s20] sm:$0xff]  ;;  %v1122_v5 = vadd.s32 128, %v1119_v4  ;;  %v205_v6 = vand.u32 15, %v1119_v4  ;;  %v1059_v4 = vmov 0  }
  0x10   : > { %275 = vrot.lane.b32.xlu1 %v1099_v0, %s1048_s21  ;;  %271 = vrot.lane.b32.xlu0 %v1101_v1, %s1048_s21  ;;  %v1107_v2 = vcombine.high %v1101_v1, %v1101_v1  ;;  %v310_v37 = vcombine.low %v1101_v1, %v1101_v1  ;;  %v311_v38 = vcombine.low %v1099_v0, %v1099_v0 }
  0x11   : > { %v212_v7 = vand.u32 15, %v1122_v5  ;;  %vm1128_vm1 = vcmp.le.s32.totalorder %v205_v6, 14  ;;  %vm1196_vm10 = vcmp.ge.s32.totalorder %v205_v6, 1  ;;  %1003 = vset.pattern.permute.xlu0 %v1059_v4  ;;  %1004 = vset.pattern.permute.xlu1 %v1059_v4 }
  0x13   : > { %vm1134_vm2 = vcmp.le.s32.totalorder %v212_v7, 14  ;;  %vm1190_vm9 = vcmp.ge.s32.totalorder %v212_v7, 1 }
  0x14   : > { %245 = vrot.lane.b32.xlu1 %v1101_v1, %s1049_s22  ;;  %273 = vrot.lane.b32.xlu0 %v1107_v2, %s1048_s21 }
  0x18   : > { %249 = vrot.lane.b32.xlu1 %v1099_v0, %s1049_s22  ;;  %247 = vrot.lane.b32.xlu0 %v1107_v2, %s1049_s22  ;;  %s1288_s22 = scalar_lea.vmem %s1309_s4, %s981_s19 }
  0x1c   : > { %299 = vrot.lane.b32.xlu1 %v1107_v2, %s1050_s23  ;;  %297 = vrot.lane.b32.xlu0 %v1101_v1, %s1050_s23 }
  0x20   : > { %301 = vrot.lane.b32.xlu0 %v1099_v0, %s1050_s23  ;;  %260 = vrot.lane.b32.xlu1 %v1107_v2, %s1051_s24 }
  0x24   : > { %258 = vrot.lane.b32.xlu1 %v1101_v1, %s1051_s24  ;;  %262 = vrot.lane.b32.xlu0 %v1099_v0, %s1051_s24 }
  0x82   : > { %v276_v8 = vpop.permute.xlu1 %275  ;;  %v272_v9 = vpop.permute.xlu0 %271 }
  0x86   : > { %v246_v12 = vpop.permute.xlu1 %245  ;;  %v274_v13 = vpop.permute.xlu0 %273 }
  0x87   : > { %v278_v14 = vsel %vm277_vm0, %v272_v9, %v274_v13  ;;  %v279_v15 = vsel %vm277_vm0, %v274_v13, %v276_v8  ;;  %v966_v8 = vld [vmem:[%s1306_s1 + $0x18] sm:$0xff] }
  0x88   : > { %v282_v16 = vsel %vm1128_vm1, %v278_v14, 0.0  ;;  %v283_v17 = vsel %vm1134_vm2, %v279_v15, 0.0 }
  0x89   : > { %v431_v18 = vrot.slane %v282_v16, 4  ;;  %v432_v19 = vrot.slane %v283_v17, 4 }
  0x8a   : > { %v250_v20 = vpop.permute.xlu1 %249  ;;  %v248_v21 = vpop.permute.xlu0 %247 }
  0x8b   : > { %v252_v22 = vsel %vm251_vm3, %v246_v12, %v248_v21  ;;  %v253_v23 = vsel %vm251_vm3, %v248_v21, %v250_v20  ;;  %435 = vrot.lane.b32.xlu0 %v432_v19, %s1052_s25  ;;  %433 = vrot.lane.b32.xlu1 %v431_v18, %s1052_s25 }
  0x8c   : > { %v256_v24 = vsel %vm1128_vm1, %v252_v22, 0.0  ;;  %v257_v25 = vsel %vm1134_vm2, %v253_v23, 0.0 }
  0x8d   : > { %v417_v26 = vrot.slane %v256_v24, 4  ;;  %v418_v27 = vrot.slane %v257_v25, 4 }
  0x8e   : > { %v300_v28 = vpop.permute.xlu1 %299  ;;  %v298_v29 = vpop.permute.xlu0 %297 }
  0x8f   : > { %v304_v30 = vsel %vm303_vm4, %v298_v29, %v300_v28  ;;  %421 = vrot.lane.b32.xlu1 %v418_v27, %s1052_s25  ;;  %419 = vrot.lane.b32.xlu0 %v417_v26, %s1052_s25  ;;  %v768_v27 = vld [vmem:[%s1308_s3] sm:$0xff] }
  0x90   : > { %v308_v31 = vsel %vm1128_vm1, %v304_v30, 0.0 }
  0x91   : > { %v649_v32 = vrot.slane %v308_v31, 4 }
  0x92   : > { %v302_v33 = vpop.permute.xlu0 %301  ;;  %v261_v40 = vpop.permute.xlu1 %260 }
  0x93   : > { %v305_v34 = vsel %vm303_vm4, %v300_v28, %v302_v33  ;;  %651 = vrot.lane.b32.xlu0 %v649_v32, %s1053_s26  ;;  %v339_v32 = vld [vmem:[%s1306_s1] sm:$0xff] }
  0x94   : > { %v309_v35 = vsel %vm1134_vm2, %v305_v34, 0.0 }
  0x95   : > { %v650_v36 = vrot.slane %v309_v35, 4 }
  0x96   : > { %v259_v41 = vpop.permute.xlu1 %258  ;;  %v263_v42 = vpop.permute.xlu0 %262 }
  0x97   : > { %638 = vrot.lane.b32.xlu0 %v431_v18, %s1053_s26  ;;  %653 = vrot.lane.b32.xlu1 %v650_v36, %s1053_s26  ;;  %v265_v43 = vsel %vm264_vm5, %v259_v41, %v261_v40  ;;  %v266_v59 = vsel %vm264_vm5, %v261_v40, %v263_v42  ;;  %v238_v18 = vsel %vm1190_vm9, %v1107_v2, 0.0 }
  0x98   : > { %v270_v5 = vsel %vm1190_vm9, %v266_v59, 0.0  ;;  %v269_v7 = vsel %vm1196_vm10, %v265_v43, 0.0 }
  0x9b   : > { %325 = vrot.lane.b32.xlu0 %v1101_v1, %s1054_s27  ;;  %640 = vrot.lane.b32.xlu1 %v432_v19, %s1053_s26 }
  0x9f   : > { %323 = vrot.lane.b32.xlu0 %v310_v37, %s1054_s27  ;;  %327 = vrot.lane.b32.xlu1 %v311_v38, %s1054_s27 }
  0xa3   : > { %314 = vrot.lane.b32.xlu1 %v1101_v1, %s1055_s28  ;;  %316 = vrot.lane.b32.xlu0 %v311_v38, %s1055_s28 }
  0xa7   : > { %288 = vrot.lane.b32.xlu1 %v1099_v0, %s1056_s29  ;;  %286 = vrot.lane.b32.xlu0 %v1107_v2, %s1056_s29 }
  0xab   : > { %284 = vrot.lane.b32.xlu1 %v1101_v1, %s1056_s29  ;;  %312 = vrot.lane.b32.xlu0 %v310_v37, %s1055_s28 }
  0xaf   : > { %551 = vrot.lane.b32.xlu1 %v1101_v1, %s1058_s30  ;;  %553 = vrot.lane.b32.xlu0 %v311_v38, %s1058_s30 }
  0xb3   : > { %549 = vrot.lane.b32.xlu1 %v310_v37, %s1058_s30 }
  0xfd   : > { %v434_v44 = vpop.permute.xlu1 %433  ;;  %v436_v45 = vpop.permute.xlu0 %435 }
  0xfe   : > { %v444_v46 = vsel %vm334_vm6, %v265_v43, %v434_v44  ;;  %v446_v47 = vsel %vm334_vm6, %v263_v42, %v436_v45  ;;  %v437_v57 = vsel %vm423_vm7, %v434_v44, %v436_v45  ;;  %v964_v44 = vld [vmem:[%s1306_s1 + $0x10] sm:$0xff] }
  0xff   : > { %461 = vrot.lane.b32.xlu1 %v444_v46, %s1055_s28  ;;  %465 = vrot.lane.b32.xlu0 %v446_v47, %s1055_s28  ;;  %v445_v62 = vsel %vm334_vm6, %v266_v59, %v437_v57 }
 0x101   : > { %v422_v48 = vpop.permute.xlu1 %421  ;;  %v420_v49 = vpop.permute.xlu0 %419 }
 0x102   : > { %v443_v50 = vsel %vm334_vm6, %v1099_v0, %v422_v48  ;;  %v441_v52 = vsel %vm334_vm6, %v1101_v1, %v420_v49  ;;  %v424_v9 = vsel %vm423_vm7, %v420_v49, %v422_v48 }
 0x103   : > { %459 = vrot.lane.b32.xlu0 %v443_v50, %s1055_s28  ;;  %v442_v13 = vsel %vm334_vm6, %v1107_v2, %v424_v9 }
 0x105   : > { %v652_v51 = vpop.permute.xlu0 %651 }
 0x106   : > { %v662_v56 = vsel %vm334_vm6, %v265_v43, %v652_v51 }
 0x107   : > { %455 = vrot.lane.b32.xlu0 %v441_v52, %s1055_s28 }
 0x109   : > { %v654_v53 = vpop.permute.xlu1 %653  ;;  %v639_v54 = vpop.permute.xlu0 %638 }
 0x10a   : > { %v664_v55 = vsel %vm334_vm6, %v263_v42, %v654_v53  ;;  %v655_v58 = vsel %vm642_vm8, %v652_v51, %v654_v53  ;;  %v659_v26 = vsel %vm334_vm6, %v1101_v1, %v639_v54 }
 0x10b   : > { %683 = vrot.lane.b32.xlu1 %v664_v55, %s1054_s27  ;;  %679 = vrot.lane.b32.xlu0 %v662_v56, %s1054_s27  ;;  %v663_v63 = vsel %vm334_vm6, %v266_v59, %v655_v58  ;;  %v962_v58 = vld [vmem:[%s1306_s1 + $0x8] sm:$0xff] }
 0x10d   : > { %v641_v60 = vpop.permute.xlu1 %640  ;;  %v326_v61 = vpop.permute.xlu0 %325 }
 0x10e   : > { %v661_v14 = vsel %vm334_vm6, %v1099_v0, %v641_v60  ;;  %v643_v15 = vsel %vm642_vm8, %v639_v54, %v641_v60  ;;  %v767_v0 = vld [vmem:[%s1307_s2] sm:$0xff] }
 0x10f   : > { %463 = vrot.lane.b32.xlu1 %v445_v62, %s1055_s28  ;;  %681 = vrot.lane.b32.xlu0 %v663_v63, %s1054_s27  ;;  %v660_v21 = vsel %vm334_vm6, %v1107_v2, %v643_v15  ;;  %v237_v2 = vsel %vm1196_vm10, %v1101_v1, 0.0 }
 0x111   : > { %v328_v10 = vpop.permute.xlu1 %327  ;;  %v324_v11 = vpop.permute.xlu0 %323 }
 0x112   : > { %v331_v6 = vsel %vm329_vm11, %v326_v61, %v328_v10  ;;  %v330_v12 = vsel %vm329_vm11, %v324_v11, %v326_v61 }
 0x113   : > { %457 = vrot.lane.b32.xlu1 %v442_v13, %s1055_s28  ;;  %677 = vrot.lane.b32.xlu0 %v661_v14, %s1054_s27  ;;  %v338_v16 = vsel %vm334_vm6, %v270_v5, %v331_v6  ;;  %v337_v17 = vsel %vm334_vm6, %v269_v7, %v330_v12 }
 0x114   : > { %372 = vmatprep.subr.mxu0 %v338_v16 }
 0x115   : > { %v315_v19 = vpop.permute.xlu1 %314  ;;  %373 = vmatpush1.msra.mxu0 %v337_v17  ;;  %v317_v20 = vpop.permute.xlu0 %316 }
 0x116   : > { %v320_v22 = vsel %vm318_vm12, %v315_v19, %v317_v20 }
 0x117   : > { %675 = vrot.lane.b32.xlu1 %v660_v21, %s1054_s27  ;;  %v336_v23 = vsel %vm334_vm6, %v238_v18, %v320_v22  ;;  %771 = vperm.xlu0 %1003, %v767_v0  }
 0x118   : > { %374 = vmatprep.subr.mxu0 %v336_v23 }
 0x119   : > { %v289_v24 = vpop.permute.xlu1 %288  ;;  %v287_v25 = vpop.permute.xlu0 %286 }
 0x11a   : > { %v292_v28 = vsel %vm290_vm13, %v287_v25, %v289_v24 }
 0x11b   : > { %673 = vrot.lane.b32.xlu1 %v659_v26, %s1054_s27  ;;  %v296_v1 = vsel %vm1190_vm9, %v292_v28, 0.0 }
 0x11d   : > { %v285_v29 = vpop.permute.xlu1 %284  ;;  %v313_v30 = vpop.permute.xlu0 %312 }
 0x11e   : > { %v319_v31 = vsel %vm318_vm12, %v313_v30, %v315_v19  ;;  %v291_v34 = vsel %vm290_vm13, %v285_v29, %v287_v25 }
 0x11f   : > { %v335_v33 = vsel %vm334_vm6, %v237_v2, %v319_v31  ;;  %778 = vperm.xlu1 %1004, %v768_v27   ;;  %v295_v40 = vsel %vm1196_vm10, %v291_v34, 0.0 }
 0x120   : > { %375 = vmatpush1.msra.mxu0 %v335_v33 }
 0x121   : > { %v552_v35 = vpop.permute.xlu1 %551  ;;  %v554_v36 = vpop.permute.xlu0 %553  ;;  %961 = vmatmul.mubr.msk.f32.vlgmr.msra.gmra.mxu0 %vm340_vm14, %v339_v32 }
 0x122   : > { %v557_v37 = vsel %vm555_vm15, %v552_v35, %v554_v36  ;;  %631 = vmatprep.mubr.f32.mxu0 %v1057_v39 }
 0x123   : > { %v561_v38 = vsel %vm334_vm6, %v296_v1, %v557_v37 }
 0x124   : > { %595 = vmatprep.subr.mxu0 %v561_v38 }
 0x125   : > { %v550_v41 = vpop.permute.xlu1 %549 }
 0x126   : > { %v556_v42 = vsel %vm555_vm15, %v550_v41, %v552_v35 }
 0x127   : > { %v560_v43 = vsel %vm334_vm6, %v295_v40, %v556_v42 }
 0x128   : > { %596 = vmatpush1.msra.mxu0 %v560_v43 }
 0x129   : > { %597 = vmatprep.subr.mxu0 %v338_v16 }
 0x12a   : > { %598 = vmatpush1.msra.mxu0 %v337_v17 }
 0x12b   : > { %965 = vmatmul.mubr.msk.f32.vlgmr.msra.gmra.mxu0 %vm340_vm14, %v964_v44 }
 0x171   : > { %v466_v45 = vpop.permute.xlu0 %465  ;;  %v462_v47 = vpop.permute.xlu1 %461 }
 0x175   : > { %v460_v46 = vpop.permute.xlu0 %459 }
 0x179   : > { %v456_v48 = vpop.permute.xlu0 %455 }
 0x17d   : > { %v684_v49 = vpop.permute.xlu1 %683  ;;  %v680_v50 = vpop.permute.xlu0 %679 }
 0x181   : > { %v464_v51 = vpop.permute.xlu1 %463  ;;  %v682_v54 = vpop.permute.xlu0 %681 }
 0x182   : > { %v470_v52 = vsel %vm318_vm12, %v464_v51, %v466_v45  ;;  %v469_v53 = vsel %vm318_vm12, %v462_v47, %v464_v51  ;;  %v688_v59 = vsel %vm329_vm11, %v682_v54, %v684_v49  ;;  %v687_v60 = vsel %vm329_vm11, %v680_v50, %v682_v54 }
 0x183   : > { %506 = vmatprep.subr.mxu1 %v470_v52 }
 0x184   : > { %507 = vmatpush1.msra.mxu1 %v469_v53 }
 0x185   : > { %v458_v55 = vpop.permute.xlu1 %457  ;;  %v678_v61 = vpop.permute.xlu0 %677 }
 0x186   : > { %v468_v56 = vsel %vm318_vm12, %v458_v55, %v460_v46  ;;  %v467_v57 = vsel %vm318_vm12, %v456_v48, %v458_v55 }
 0x187   : > { %508 = vmatprep.subr.mxu1 %v468_v56 }
 0x188   : > { %509 = vmatpush1.msra.mxu1 %v467_v57 }
 0x189   : > { %v676_v62 = vpop.permute.xlu1 %675  ;;  %963 = vmatmul.mubr.msk.f32.vlgmr.msra.gmra.mxu1 %vm340_vm14, %v962_v58  ;;  %724 = vmatprep.subr.mxu1 %v688_v59 }
 0x18a   : > { %725 = vmatpush1.msra.mxu1 %v687_v60  ;;  %v686_v63 = vsel %vm329_vm11, %v676_v62, %v678_v61  ;;  %760 = vmatprep.mubr.f32.mxu1 %v1057_v39 }
 0x18b   : > { %726 = vmatprep.subr.mxu1 %v686_v63 }
 0x18d   : > { %v674_v3 = vpop.permute.xlu1 %673 }
 0x18e   : > { %v685_v9 = vsel %vm329_vm11, %v674_v3, %v676_v62 }
 0x18f   : > { %727 = vmatpush1.msra.mxu1 %v685_v9 }
 0x190   : > { %967 = vmatmul.mubr.msk.f32.vlgmr.msra.gmra.mxu1 %vm340_vm14, %v966_v8 }
 0x192   : > { %v1272_v10 = vpop.permute.xlu0 %771 }
 0x19a   : > { %v1274_v5 = vpop.permute.xlu1 %778 }
 0x1e1   : > { %v410_v11 = vpop.f32.mrf.mxu0 }
 0x1e2   : > { %v774_v7 = vmul.f32 %v1272_v10, %v410_v11 }
 0x1e3   : > { %v412_v4 = vpop.f32.mrf.mxu0 }
 0x1e4   : > { %v775_v39 = vmul.f32 %v1272_v10, %v412_v4  ;;  %v781_v6 = vadd.f32 %v1274_v5, %v774_v7 }
 0x1e6   : > { %v782_v12 = vadd.f32 %v1274_v5, %v775_v39  ;;  %v968_v13 = vmul.f32 -1.442695, %v781_v6 }
 0x1e8   : > { %1008 = vpow2.f32 %v968_v13  ;;  %v969_v14 = vmul.f32 -1.442695, %v782_v12 }
 0x1ea   : > { %1010 = vpow2.f32 %v969_v14 }
 0x1eb   : > { %v633_v15 = vpop.f32.mrf.mxu0 }
 0x1ec   : > { %v838_v16 = vmul.f32 %v1272_v10, %v633_v15 }
 0x1ed   : > { %v635_v17 = vpop.f32.mrf.mxu0 }
 0x1ee   : > { %v840_v18 = vadd.f32 %v838_v16, %v1274_v5  ;;  %v839_v0 = vmul.f32 %v1272_v10, %v635_v17 }
 0x1f0   : > { %v973_v19 = vmul.f32 -1.442695, %v840_v18  ;;  %v841_v20 = vadd.f32 %v839_v0, %v1274_v5 }
 0x1f2   : > { %1012 = vpow2.f32 %v973_v19  ;;  %v974_v21 = vmul.f32 -1.442695, %v841_v20 }
 0x1f4   : > { %1014 = vpow2.f32 %v974_v21 }
 0x1f5   : > { %v1009_v22 = vpop.eup %1008 }
 0x1f6   : > { %v789_v23 = vadd.f32 1.0, %v1009_v22 }
 0x1f7   : > { %v1011_v24 = vpop.eup %1010 }
 0x1f8   : > { %v790_v25 = vadd.f32 1.0, %v1011_v24  ;;  %1016 = vrcp.f32 %v789_v23 }
 0x1fa   : > { %1018 = vrcp.f32 %v790_v25 }
 0x1ff   : > { %v1013_v26 = vpop.eup %1012 }
 0x200   : > { %v848_v2 = vadd.f32 1.0, %v1013_v26 }
 0x201   : > { %v1015_v27 = vpop.eup %1014 }
 0x202   : > { %1020 = vrcp.f32 %v848_v2  ;;  %v849_v28 = vadd.f32 1.0, %v1015_v27 }
 0x204   : > { %1022 = vrcp.f32 %v849_v28 }
 0x205   : > { %v1017_v29 = vpop.eup %1016 }
 0x206   : > { %v797_v30 = vrot.slane %v1017_v29, 4 }
 0x207   : > { %v1019_v31 = vpop.eup %1018 }
 0x208   : > { %v798_v32 = vrot.slane %v1019_v31, 4  ;;  %v801_v33 = vmul.f32 %v797_v30, %v781_v6 }
 0x20a   : > { %v802_v1 = vmul.f32 %v798_v32, %v782_v12 }
 0x20c   : > { %v805_v34 = vcombine.low %v801_v33, %v802_v1 }
 0x20e   : > { %807 = vst [vmem:[%s1288_s22] sm:$0xff] %v805_v34 }
 0x20f   : > { %v1021_v35 = vpop.eup %1020 }
 0x210   : > { %v856_v36 = vrot.slane %v1021_v35, 4 }
 0x211   : > { %v1023_v37 = vpop.eup %1022 }
 0x212   : > { %v860_v38 = vmul.f32 %v856_v36, %v840_v18  ;;  %v857_v40 = vrot.slane %v1023_v37, 4 }
 0x214   : > { %v861_v41 = vmul.f32 %v857_v40, %v841_v20 }
 0x216   : > { %v864_v42 = vcombine.low %v860_v38, %v861_v41 }
 0x218   : > { %975 = vst [vmem:[%s1288_s22 + $0x10] sm:$0xff] %v864_v42 }
 0x249   : > { %v544_v43 = vpop.f32.mrf.mxu1 }
 0x24a   : > { %v808_v44 = vmul.f32 %v1272_v10, %v544_v43 }
 0x24b   : > { %v546_v45 = vpop.f32.mrf.mxu1 }
 0x24c   : > { %v810_v46 = vadd.f32 %v808_v44, %v1274_v5  ;;  %v809_v47 = vmul.f32 %v1272_v10, %v546_v45 }
 0x24e   : > { %v970_v48 = vmul.f32 -1.442695, %v810_v46  ;;  %v811_v49 = vadd.f32 %v809_v47, %v1274_v5 }
 0x250   : > { %1024 = vpow2.f32 %v970_v48  ;;  %v971_v50 = vmul.f32 -1.442695, %v811_v49  ;;  %v762_v51 = vpop.f32.mrf.mxu1 }
 0x251   : > { %v868_v52 = vmul.f32 %v1272_v10, %v762_v51 }
 0x252   : > { %1026 = vpow2.f32 %v971_v50  ;;  %v764_v53 = vpop.f32.mrf.mxu1 }
 0x253   : > { %v870_v54 = vadd.f32 %v868_v52, %v1274_v5  ;;  %v869_v55 = vmul.f32 %v1272_v10, %v764_v53 }
 0x255   : > { %v976_v56 = vmul.f32 -1.442695, %v870_v54  ;;  %v871_v57 = vadd.f32 %v869_v55, %v1274_v5 }
 0x257   : > { %1028 = vpow2.f32 %v976_v56  ;;  %v977_v58 = vmul.f32 -1.442695, %v871_v57 }
 0x259   : > { %1030 = vpow2.f32 %v977_v58 }
 0x25d   : > { %v1025_v59 = vpop.eup %1024 }
 0x25e   : > { %v818_v60 = vadd.f32 1.0, %v1025_v59 }
 0x25f   : > { %v1027_v61 = vpop.eup %1026 }
 0x260   : > { %1032 = vrcp.f32 %v818_v60  ;;  %v819_v62 = vadd.f32 1.0, %v1027_v61 }
 0x262   : > { %1034 = vrcp.f32 %v819_v62 }
 0x264   : > { %v1029_v63 = vpop.eup %1028 }
 0x265   : > { %v878_v3 = vadd.f32 1.0, %v1029_v63 }
 0x266   : > { %v1031_v8 = vpop.eup %1030 }
 0x267   : > { %1036 = vrcp.f32 %v878_v3  ;;  %v879_v9 = vadd.f32 1.0, %v1031_v8 }
 0x269   : > { %1038 = vrcp.f32 %v879_v9 }
 0x26d   : > { %v1033_v10 = vpop.eup %1032 }
 0x26e   : > { %v826_v11 = vrot.slane %v1033_v10, 4 }
 0x26f   : > { %v1035_v5 = vpop.eup %1034 }
 0x270   : > { %v827_v7 = vrot.slane %v1035_v5, 4  ;;  %v830_v4 = vmul.f32 %v826_v11, %v810_v46 }
 0x272   : > { %v831_v39 = vmul.f32 %v827_v7, %v811_v49 }
 0x274   : > { %v1037_v6 = vpop.eup %1036  ;;  %v834_v12 = vcombine.low %v830_v4, %v831_v39 }
 0x275   : > { %v886_v13 = vrot.slane %v1037_v6, 4 }
 0x276   : > { %v1039_v14 = vpop.eup %1038  ;;  %972 = vst [vmem:[%s1288_s22 + $0x8] sm:$0xff] %v834_v12 }
 0x277   : > { %v887_v15 = vrot.slane %v1039_v14, 4  ;;  %v890_v16 = vmul.f32 %v886_v13, %v870_v54 }
 0x279   : > { %v891_v17 = vmul.f32 %v887_v15, %v871_v57 }
 0x27b   : > { %v894_v18 = vcombine.low %v890_v16, %v891_v17 }
 0x27d   : > { %978 = vst [vmem:[%s1288_s22 + $0x18] sm:$0xff] %v894_v18 }
 0x27e PF: > { %s14_s15 = sadd.s32 1, %s1046_s15  }
 0x27f   : > { %p11_p4 = scmp.ge.s32.totalorder %s14_s15, 4  }
 0x281   :  { %13 = sbr.rel (!%p11_p4) target bundleno = 1 (0x1), region = 72 }

// kernel: upblock_forward.2
= control target key start
LH: loop header
LB: loop body
LE: loop exit
PB: predicated region body
PF: predicated region fallthrough
CT: control target
= control target key end

     0   :  { %s880_s9 = smov 0   ;;  %s1065_s0 = inlined_call_operand.vmem [shape: f32[2,4,290], index: 0, kind: input, shape index: {}]   ;;  %s1066_s1 = inlined_call_operand.vmem [shape: f32[4,8,16], index: 1, kind: input, shape index: {}]   ;;  %s1067_s2 = inlined_call_operand.vmem [shape: f32[2,8,2], index: 2, kind: output, shape index: {}]  }
   0x1 LB: > { %s807_s10 = sadd.s32 4294967295, %s852_s9   ;;  %p811_p0 = scmp.ge.s32.totalorder %s852_s9, 1  ;;  %s852_s9 = sphi %s880_s9, %s12_s9  }
   0x2   : > { %p112_p1 = scmp.lt.s32.totalorder %s852_s9, 3 }
   0x4   : > { %p113_p2 = pnand %p811_p0, %p112_p1 }
   0x5   : > { %p133_p3 = scmp.lt.s32.totalorder (!%p113_p2), %s807_s10, 1  ;;  %s854_s15 = smov (!%p113_p2), 110  }
   0x6   : > { %116 = sbr.rel (%p113_p2) target bundleno = 738 (0x2e2), region = 28  ;;  %s855_s16 = smov (!%p113_p2), 126  }
   0x7   : > { %s856_s17 = smov (!%p113_p2), 94   ;;  %s857_s18 = smov (!%p113_p2), 112  }
   0x8   : > { %s858_s19 = smov (!%p113_p2), 1   ;;  %s859_s20 = smov (!%p113_p2), 17  }
   0x9   : > { %s860_s21 = smov (!%p113_p2), 111   ;;  %s861_s22 = smov (!%p113_p2), 127  }
   0xa   : > { %s862_s23 = smov (!%p113_p2), 96   ;;  %s864_s24 = smov (!%p113_p2), 95  }
   0xb   : > { %s1077_s10 = smov (!%p133_p3, %s807_s10), 1  ;;  %v142_v3 = vlaneseq  ;;  %vm221_vm0 = vcmask 900096   ;;  %vm195_vm3 = vcmask 1031168   ;;  %vm247_vm4 = vcmask 769024  }
   0xc   : > { %s823_s11 = smul.u32 12, %s1077_s10  ;;  %v863_v39 = vmov 0.0   ;;  %vm278_vm5 = vcmask 1043456   ;;  %vm208_vm6 = vcmask 916480   ;;  %vm367_vm7 = vcmask 7168   ;;  %s813_s5 = sshll.u32 %s1077_s10, 3 }
   0xd   : > { %v914_v4 = vand.u32 127, %v142_v3  ;;  %352 = vmatprep.mubr.f32.mxu0 %v863_v39  ;;  %486 = vmatprep.mubr.f32.mxu1 %v863_v39  ;;  %vm586_vm8 = vcmask 138240   ;;  %vm273_vm11 = vcmask 908288   ;;  %vm262_vm12 = vcmask 1039360   ;;  %s141_s8 = scalar_lea.vmem %s1067_s2, %s813_s5 }
   0xe   : > { %s137_s14 = scalar_lea.vmem %s1065_s0, %s823_s11  ;;  %vm234_vm13 = vcmask 785408   ;;  %vm284_vm14 = vcmask 130048   ;;  %vm499_vm15 = vcmask 777216  }
   0xf   : > { %v894_v0 = vld [vmem:[%s137_s14 + $0x8] sm:$0xf]  ;;  %v896_v1 = vld [vmem:[%s137_s14] sm:$0xff]  ;;  %v917_v5 = vadd.s32 128, %v914_v4  ;;  %v149_v6 = vand.u32 15, %v914_v4 }
  0x10   : > { %219 = vrot.lane.b32.xlu1 %v894_v0, %s854_s15  ;;  %215 = vrot.lane.b32.xlu0 %v896_v1, %s854_s15  ;;  %v902_v2 = vcombine.high %v896_v1, %v896_v1  ;;  %v254_v37 = vcombine.low %v896_v1, %v896_v1  ;;  %v255_v38 = vcombine.low %v894_v0, %v894_v0 }
  0x11   : > { %v156_v7 = vand.u32 15, %v917_v5  ;;  %vm923_vm1 = vcmp.le.s32.totalorder %v149_v6, 14  ;;  %vm990_vm10 = vcmp.ge.s32.totalorder %v149_v6, 1 }
  0x13   : > { %vm929_vm2 = vcmp.le.s32.totalorder %v156_v7, 14  ;;  %vm984_vm9 = vcmp.ge.s32.totalorder %v156_v7, 1 }
  0x14   : > { %189 = vrot.lane.b32.xlu1 %v896_v1, %s855_s16  ;;  %217 = vrot.lane.b32.xlu0 %v902_v2, %s854_s15 }
  0x18   : > { %193 = vrot.lane.b32.xlu1 %v894_v0, %s855_s16  ;;  %191 = vrot.lane.b32.xlu0 %v902_v2, %s855_s16 }
  0x1c   : > { %243 = vrot.lane.b32.xlu1 %v902_v2, %s856_s17  ;;  %241 = vrot.lane.b32.xlu0 %v896_v1, %s856_s17 }
  0x20   : > { %245 = vrot.lane.b32.xlu0 %v894_v0, %s856_s17  ;;  %204 = vrot.lane.b32.xlu1 %v902_v2, %s857_s18 }
  0x24   : > { %202 = vrot.lane.b32.xlu1 %v896_v1, %s857_s18  ;;  %206 = vrot.lane.b32.xlu0 %v894_v0, %s857_s18 }
  0x82   : > { %v220_v8 = vpop.permute.xlu1 %219  ;;  %v216_v9 = vpop.permute.xlu0 %215 }
  0x86   : > { %v190_v12 = vpop.permute.xlu1 %189  ;;  %v218_v13 = vpop.permute.xlu0 %217 }
  0x87   : > { %v222_v14 = vsel %vm221_vm0, %v216_v9, %v218_v13  ;;  %v223_v15 = vsel %vm221_vm0, %v218_v13, %v220_v8  ;;  %vm752_vm0 = vcmask 15360  }
  0x88   : > { %v226_v16 = vsel %vm923_vm1, %v222_v14, 0.0  ;;  %v227_v17 = vsel %vm929_vm2, %v223_v15, 0.0 }
  0x89   : > { %v375_v18 = vrot.slane %v226_v16, 4  ;;  %v376_v19 = vrot.slane %v227_v17, 4  ;;  %v182_v17 = vsel %vm984_vm9, %v902_v2, 0.0 }
  0x8a   : > { %v194_v20 = vpop.permute.xlu1 %193  ;;  %v192_v21 = vpop.permute.xlu0 %191 }
  0x8b   : > { %v196_v22 = vsel %vm195_vm3, %v190_v12, %v192_v21  ;;  %v197_v23 = vsel %vm195_vm3, %v192_v21, %v194_v20  ;;  %379 = vrot.lane.b32.xlu0 %v376_v19, %s858_s19  ;;  %377 = vrot.lane.b32.xlu1 %v375_v18, %s858_s19 }
  0x8c   : > { %v200_v24 = vsel %vm923_vm1, %v196_v22, 0.0  ;;  %v201_v25 = vsel %vm929_vm2, %v197_v23, 0.0 }
  0x8d   : > { %v361_v26 = vrot.slane %v200_v24, 4  ;;  %v362_v27 = vrot.slane %v201_v25, 4  ;;  %v181_v25 = vsel %vm990_vm10, %v896_v1, 0.0 }
  0x8e   : > { %v244_v28 = vpop.permute.xlu1 %243  ;;  %v242_v29 = vpop.permute.xlu0 %241 }
  0x8f   : > { %v248_v30 = vsel %vm247_vm4, %v242_v29, %v244_v28  ;;  %365 = vrot.lane.b32.xlu1 %v362_v27, %s858_s19  ;;  %363 = vrot.lane.b32.xlu0 %v361_v26, %s858_s19  ;;  %v283_v29 = vld [vmem:[%s1066_s1] sm:$0xff] }
  0x90   : > { %v252_v31 = vsel %vm923_vm1, %v248_v30, 0.0 }
  0x91   : > { %v593_v32 = vrot.slane %v252_v31, 4 }
  0x92   : > { %v246_v33 = vpop.permute.xlu0 %245  ;;  %v205_v40 = vpop.permute.xlu1 %204 }
  0x93   : > { %v249_v34 = vsel %vm247_vm4, %v244_v28, %v246_v33  ;;  %595 = vrot.lane.b32.xlu0 %v593_v32, %s859_s20 }
  0x94   : > { %v253_v35 = vsel %vm929_vm2, %v249_v34, 0.0 }
  0x95   : > { %v594_v36 = vrot.slane %v253_v35, 4 }
  0x96   : > { %v203_v41 = vpop.permute.xlu1 %202  ;;  %v207_v42 = vpop.permute.xlu0 %206 }
  0x97   : > { %582 = vrot.lane.b32.xlu0 %v375_v18, %s859_s20  ;;  %597 = vrot.lane.b32.xlu1 %v594_v36, %s859_s20  ;;  %v209_v46 = vsel %vm208_vm6, %v203_v41, %v205_v40  ;;  %v210_v54 = vsel %vm208_vm6, %v205_v40, %v207_v42  ;;  %v817_v41 = vld [vmem:[%s1066_s1 + $0x10] sm:$0xff] }
  0x98   : > { %v214_v5 = vsel %vm984_vm9, %v210_v54, 0.0  ;;  %v213_v7 = vsel %vm990_vm10, %v209_v46, 0.0 }
  0x9b   : > { %269 = vrot.lane.b32.xlu0 %v896_v1, %s860_s21  ;;  %584 = vrot.lane.b32.xlu1 %v376_v19, %s859_s20 }
  0x9f   : > { %267 = vrot.lane.b32.xlu0 %v254_v37, %s860_s21  ;;  %271 = vrot.lane.b32.xlu1 %v255_v38, %s860_s21 }
  0xa3   : > { %260 = vrot.lane.b32.xlu0 %v255_v38, %s861_s22  ;;  %258 = vrot.lane.b32.xlu1 %v896_v1, %s861_s22 }
  0xa7   : > { %232 = vrot.lane.b32.xlu0 %v894_v0, %s862_s23  ;;  %230 = vrot.lane.b32.xlu1 %v902_v2, %s862_s23 }
  0xab   : > { %228 = vrot.lane.b32.xlu0 %v896_v1, %s862_s23  ;;  %256 = vrot.lane.b32.xlu1 %v254_v37, %s861_s22 }
  0xaf   : > { %495 = vrot.lane.b32.xlu0 %v896_v1, %s864_s24  ;;  %497 = vrot.lane.b32.xlu1 %v255_v38, %s864_s24 }
  0xb3   : > { %493 = vrot.lane.b32.xlu0 %v254_v37, %s864_s24 }
  0xfd   : > { %v378_v43 = vpop.permute.xlu1 %377  ;;  %v380_v44 = vpop.permute.xlu0 %379 }
  0xfe   : > { %v390_v45 = vsel %vm278_vm5, %v207_v42, %v380_v44  ;;  %v388_v48 = vsel %vm278_vm5, %v209_v46, %v378_v43  ;;  %v381_v53 = vsel %vm367_vm7, %v378_v43, %v380_v44 }
  0xff   : > { %409 = vrot.lane.b32.xlu1 %v390_v45, %s861_s22  ;;  %v389_v58 = vsel %vm278_vm5, %v210_v54, %v381_v53 }
 0x101   : > { %v364_v47 = vpop.permute.xlu0 %363  ;;  %v366_v49 = vpop.permute.xlu1 %365 }
 0x102   : > { %v387_v51 = vsel %vm278_vm5, %v894_v0, %v366_v49  ;;  %v385_v57 = vsel %vm278_vm5, %v896_v1, %v364_v47  ;;  %v368_v59 = vsel %vm367_vm7, %v364_v47, %v366_v49 }
 0x103   : > { %405 = vrot.lane.b32.xlu1 %v388_v48, %s861_s22  ;;  %v386_v63 = vsel %vm278_vm5, %v902_v2, %v368_v59 }
 0x105   : > { %v596_v50 = vpop.permute.xlu0 %595 }
 0x106   : > { %v606_v52 = vsel %vm278_vm5, %v209_v46, %v596_v50 }
 0x107   : > { %403 = vrot.lane.b32.xlu1 %v387_v51, %s861_s22  ;;  %623 = vrot.lane.b32.xlu0 %v606_v52, %s860_s21 }
 0x109   : > { %v598_v55 = vpop.permute.xlu1 %597  ;;  %v583_v56 = vpop.permute.xlu0 %582 }
 0x10a   : > { %v608_v62 = vsel %vm278_vm5, %v207_v42, %v598_v55  ;;  %v599_v9 = vsel %vm586_vm8, %v596_v50, %v598_v55  ;;  %v603_v21 = vsel %vm278_vm5, %v896_v1, %v583_v56 }
 0x10b   : > { %399 = vrot.lane.b32.xlu1 %v385_v57, %s861_s22  ;;  %407 = vrot.lane.b32.xlu0 %v389_v58, %s861_s22  ;;  %v607_v13 = vsel %vm278_vm5, %v210_v54, %v599_v9  ;;  %v815_v54 = vld [vmem:[%s1066_s1 + $0x8] sm:$0xff] }
 0x10d   : > { %v585_v60 = vpop.permute.xlu1 %584  ;;  %v270_v61 = vpop.permute.xlu0 %269 }
 0x10e   : > { %v587_v10 = vsel %vm586_vm8, %v583_v56, %v585_v60  ;;  %v605_v20 = vsel %vm278_vm5, %v894_v0, %v585_v60 }
 0x10f   : > { %627 = vrot.lane.b32.xlu1 %v608_v62, %s860_s21  ;;  %401 = vrot.lane.b32.xlu0 %v386_v63, %s861_s22  ;;  %v604_v14 = vsel %vm278_vm5, %v902_v2, %v587_v10  ;;  %v819_v63 = vld [vmem:[%s1066_s1 + $0x18] sm:$0xff] }
 0x111   : > { %v272_v11 = vpop.permute.xlu1 %271  ;;  %v268_v12 = vpop.permute.xlu0 %267 }
 0x112   : > { %v275_v4 = vsel %vm273_vm11, %v270_v61, %v272_v11  ;;  %v274_v6 = vsel %vm273_vm11, %v268_v12, %v270_v61 }
 0x113   : > { %625 = vrot.lane.b32.xlu0 %v607_v13, %s860_s21  ;;  %619 = vrot.lane.b32.xlu1 %v604_v14, %s860_s21  ;;  %v282_v15 = vsel %vm278_vm5, %v214_v5, %v275_v4  ;;  %v281_v16 = vsel %vm278_vm5, %v213_v7, %v274_v6 }
 0x114   : > { %316 = vmatprep.subr.mxu0 %v282_v15 }
 0x115   : > { %317 = vmatpush1.msra.mxu0 %v281_v16  ;;  %v261_v18 = vpop.permute.xlu0 %260  ;;  %v259_v19 = vpop.permute.xlu1 %258 }
 0x116   : > { %v264_v22 = vsel %vm262_vm12, %v259_v19, %v261_v18 }
 0x117   : > { %621 = vrot.lane.b32.xlu0 %v605_v20, %s860_s21  ;;  %617 = vrot.lane.b32.xlu1 %v603_v21, %s860_s21  ;;  %v280_v23 = vsel %vm278_vm5, %v182_v17, %v264_v22 }
 0x118   : > { %318 = vmatprep.subr.mxu0 %v280_v23 }
 0x119   : > { %v233_v24 = vpop.permute.xlu0 %232  ;;  %v231_v2 = vpop.permute.xlu1 %230 }
 0x11a   : > { %v236_v0 = vsel %vm234_vm13, %v231_v2, %v233_v24 }
 0x11b   : > { %v240_v31 = vsel %vm984_vm9, %v236_v0, 0.0 }
 0x11d   : > { %v229_v26 = vpop.permute.xlu0 %228  ;;  %v257_v27 = vpop.permute.xlu1 %256 }
 0x11e   : > { %v263_v28 = vsel %vm262_vm12, %v257_v27, %v259_v19  ;;  %v235_v32 = vsel %vm234_vm13, %v229_v26, %v231_v2 }
 0x11f   : > { %v279_v30 = vsel %vm278_vm5, %v181_v25, %v263_v28  ;;  %v239_v36 = vsel %vm990_vm10, %v235_v32, 0.0 }
 0x120   : > { %319 = vmatpush1.msra.mxu0 %v279_v30 }
 0x121   : > { %v496_v33 = vpop.permute.xlu0 %495  ;;  %v498_v1 = vpop.permute.xlu1 %497  ;;  %814 = vmatmul.mubr.msk.f32.vlgmr.msra.gmra.mxu0 %vm284_vm14, %v283_v29 }
 0x122   : > { %v501_v34 = vsel %vm499_vm15, %v496_v33, %v498_v1  ;;  %575 = vmatprep.mubr.f32.mxu0 %v863_v39 }
 0x123   : > { %v505_v35 = vsel %vm278_vm5, %v240_v31, %v501_v34 }
 0x124   : > { %539 = vmatprep.subr.mxu0 %v505_v35 }
 0x125   : > { %v494_v37 = vpop.permute.xlu0 %493 }
 0x126   : > { %v500_v38 = vsel %vm499_vm15, %v494_v37, %v496_v33 }
 0x127   : > { %v504_v40 = vsel %vm278_vm5, %v239_v36, %v500_v38 }
 0x128   : > { %540 = vmatpush1.msra.mxu0 %v504_v40 }
 0x129   : > { %541 = vmatprep.subr.mxu0 %v282_v15 }
 0x12a   : > { %542 = vmatpush1.msra.mxu0 %v281_v16 }
 0x12b   : > { %818 = vmatmul.mubr.msk.f32.vlgmr.msra.gmra.mxu0 %vm284_vm14, %v817_v41 }
 0x171   : > { %v410_v42 = vpop.permute.xlu1 %409 }
 0x175   : > { %v406_v43 = vpop.permute.xlu1 %405 }
 0x179   : > { %v404_v44 = vpop.permute.xlu1 %403  ;;  %v624_v45 = vpop.permute.xlu0 %623 }
 0x17d   : > { %v400_v46 = vpop.permute.xlu1 %399  ;;  %v408_v47 = vpop.permute.xlu0 %407 }
 0x17e   : > { %v414_v48 = vsel %vm262_vm12, %v408_v47, %v410_v42  ;;  %v413_v49 = vsel %vm262_vm12, %v406_v43, %v408_v47 }
 0x17f   : > { %450 = vmatprep.subr.mxu1 %v414_v48 }
 0x180   : > { %451 = vmatpush1.msra.mxu1 %v413_v49 }
 0x181   : > { %v628_v50 = vpop.permute.xlu1 %627  ;;  %v402_v51 = vpop.permute.xlu0 %401 }
 0x182   : > { %v412_v52 = vsel %vm262_vm12, %v402_v51, %v404_v44  ;;  %v411_v53 = vsel %vm262_vm12, %v400_v46, %v402_v51 }
 0x183   : > { %452 = vmatprep.subr.mxu1 %v412_v52 }
 0x184   : > { %453 = vmatpush1.msra.mxu1 %v411_v53 }
 0x185   : > { %v620_v55 = vpop.permute.xlu1 %619  ;;  %816 = vmatmul.mubr.msk.f32.vlgmr.msra.gmra.mxu1 %vm284_vm14, %v815_v54  ;;  %v626_v56 = vpop.permute.xlu0 %625 }
 0x186   : > { %v631_v57 = vsel %vm273_vm11, %v624_v45, %v626_v56  ;;  %v632_v58 = vsel %vm273_vm11, %v626_v56, %v628_v50  ;;  %704 = vmatprep.mubr.f32.mxu1 %v863_v39 }
 0x187   : > { %668 = vmatprep.subr.mxu1 %v632_v58 }
 0x188   : > { %669 = vmatpush1.msra.mxu1 %v631_v57 }
 0x189   : > { %v618_v59 = vpop.permute.xlu1 %617  ;;  %v622_v60 = vpop.permute.xlu0 %621 }
 0x18a   : > { %v629_v61 = vsel %vm273_vm11, %v618_v59, %v620_v55  ;;  %v630_v62 = vsel %vm273_vm11, %v620_v55, %v622_v60 }
 0x18b   : > { %670 = vmatprep.subr.mxu1 %v630_v62 }
 0x18c   : > { %671 = vmatpush1.msra.mxu1 %v629_v61 }
 0x18d   : > { %820 = vmatmul.mubr.msk.f32.vlgmr.msra.gmra.mxu1 %vm284_vm14, %v819_v63 }
 0x1e1   : > { %v354_v3 = vpop.f32.mrf.mxu0 }
 0x1e2   : > { %v727_v8 = vmul.f32 %v354_v3, %v354_v3 }
 0x1e3   : > { %v356_v9 = vpop.f32.mrf.mxu0 }
 0x1e4   : > { %v728_v39 = vmul.f32 %v356_v9, %v356_v9  ;;  %v711_v10 = vadd.f32 %v356_v9, %v354_v3 }
 0x1e6   : > { %712 = vadd.xlane.f32.xlu0 %v711_v10  ;;  %v729_v11 = vadd.f32 %v728_v39, %v727_v8 }
 0x1ea   : > { %730 = vadd.xlane.f32.xlu0 %v729_v11 }
 0x1eb   : > { %v577_v12 = vpop.f32.mrf.mxu0 }
 0x1ec   : > { %v739_v5 = vmul.f32 %v577_v12, %v577_v12 }
 0x1ed   : > { %v579_v7 = vpop.f32.mrf.mxu0 }
 0x1ee   : > { %v719_v4 = vadd.f32 %v579_v7, %v577_v12  ;;  %v740_v6 = vmul.f32 %v579_v7, %v579_v7 }
 0x1f0   : > { %720 = vadd.xlane.f32.xlu1 %v719_v4  ;;  %v741_v13 = vadd.f32 %v740_v6, %v739_v5 }
 0x1f2   : > { %742 = vadd.xlane.f32.xlu0 %v741_v13 }
 0x245   : > { %v488_v14 = vpop.f32.mrf.mxu1 }
 0x246   : > { %v733_v15 = vmul.f32 %v488_v14, %v488_v14 }
 0x247   : > { %v490_v16 = vpop.f32.mrf.mxu1 }
 0x248   : > { %v734_v17 = vmul.f32 %v490_v16, %v490_v16  ;;  %v715_v18 = vadd.f32 %v490_v16, %v488_v14 }
 0x24a   : > { %716 = vadd.xlane.f32.xlu1 %v715_v18  ;;  %v735_v19 = vadd.f32 %v734_v17, %v733_v15 }
 0x24c   : > { %736 = vadd.xlane.f32.xlu0 %v735_v19 }
 0x24d   : > { %v706_v20 = vpop.f32.mrf.mxu1 }
 0x24e   : > { %v745_v22 = vmul.f32 %v706_v20, %v706_v20 }
 0x24f   : > { %v708_v21 = vpop.f32.mrf.mxu1 }
 0x250   : > { %v723_v23 = vadd.f32 %v708_v21, %v706_v20  ;;  %v746_v24 = vmul.f32 %v708_v21, %v708_v21 }
 0x252   : > { %724 = vadd.xlane.f32.xlu1 %v723_v23  ;;  %v747_v2 = vadd.f32 %v746_v24, %v745_v22 }
 0x254   : > { %748 = vadd.xlane.f32.xlu0 %v747_v2 }
 0x26f   : > { %v713_v25 = vpop.xlane.xlu0 %712 }
 0x273   : > { %v731_v0 = vpop.xlane.xlu0 %730 }
 0x279   : > { %v721_v26 = vpop.xlane.xlu1 %720 }
 0x27b   : > { %v743_v27 = vpop.xlane.xlu0 %742 }
 0x2d3   : > { %v717_v28 = vpop.xlane.xlu1 %716 }
 0x2d4   : > { %v718_v30 = vadd.f32 %v717_v28, %v713_v25 }
 0x2d5   : > { %v737_v29 = vpop.xlane.xlu0 %736 }
 0x2d6   : > { %v738_v31 = vadd.f32 %v737_v29, %v731_v0  ;;  %v722_v33 = vadd.f32 %v721_v26, %v718_v30 }
 0x2d8   : > { %v744_v1 = vadd.f32 %v743_v27, %v738_v31 }
 0x2db   : > { %v725_v32 = vpop.xlane.xlu1 %724 }
 0x2dc   : > { %v726_v35 = vadd.f32 %v725_v32, %v722_v33 }
 0x2dd   : > { %v749_v34 = vpop.xlane.xlu0 %748 }
 0x2de   : > { %v750_v36 = vadd.f32 %v749_v34, %v744_v1 }
 0x2e0   : > { %v751_v37 = vsel %vm367_vm7, %v726_v35, %v750_v36 }
 0x2e1   : > { %753 = vst.msk [vmem:[%s141_s8] sm:$0xff] %vm752_vm0, %v751_v37 }
 0x2e2 PF: > { %s12_s9 = sadd.s32 1, %s852_s9  }
 0x2e3   : > { %p9_p4 = scmp.ge.s32.totalorder %s12_s9, 4  }
 0x2e5   :  { %11 = sbr.rel (!%p9_p4) target bundleno = 1 (0x1), region = 61 }

</bundles_post_ra>
